<compile_context>
chip_gen: v7x
topology: tpu7x:2x2x1
jax: 0.10.0
libtpu: 0.0.40
codegen_flags: <defaults>
</compile_context>

<pallas_src>
import math
import functools

import jax
import jax.numpy as jnp
from jax.experimental import pallas as pl
from jax.experimental.pallas import tpu as pltpu

LN_EPS = 1e-5


def _layernorm(v, w, b):
    # single-pass f32 LayerNorm, biased variance (matches torch.nn.LayerNorm)
    mu = jnp.mean(v, axis=-1, keepdims=True)
    ms = jnp.mean(v * v, axis=-1, keepdims=True)
    var = ms - mu * mu
    return (v - mu) * jax.lax.rsqrt(var + LN_EPS) * w + b


def block_kernel(n_head,
                 x_ref,
                 ln1w_ref, ln1b_ref,
                 wqkv_ref, bqkv_ref,
                 wpr_ref, bpr_ref,
                 ln2w_ref, ln2b_ref,
                 wfc_ref, bfc_ref,
                 wp2_ref, bp2_ref,
                 o_ref):
    x = x_ref[0]                                   # (T, C) f32, one batch element per step
    T, C = x.shape
    nh = n_head
    hd = C // nh
    scale = 1.0 / math.sqrt(hd)
    bf16 = jnp.bfloat16

    # ---------------- attention branch ----------------
    h = _layernorm(x, ln1w_ref[...], ln1b_ref[...])
    qkv = jnp.dot(h.astype(bf16), wqkv_ref[...],
                  preferred_element_type=jnp.float32) + bqkv_ref[...]        # (T, 3C) f32

    # head-major (3*nh, T, hd): one reshape + one transpose, then cheap major-dim slices
    qkv_h = qkv.reshape(T, 3 * nh, hd).transpose(1, 0, 2)                    # (3nh, T, hd)
    q = qkv_h[:nh]                                                           # (nh, T, hd)
    k = qkv_h[nh:2 * nh]
    v = qkv_h[2 * nh:]

    # head-batched score matmul; contraction on shared last dim (no explicit k.T)
    s = jnp.einsum('htd,hsd->hts', q.astype(bf16), k.astype(bf16),
                   preferred_element_type=jnp.float32) * scale               # (nh, T, T)

    # causal mask from one 2-D iota pair, broadcast over heads
    row = jax.lax.broadcasted_iota(jnp.int32, (T, T), 0)
    col = jax.lax.broadcasted_iota(jnp.int32, (T, T), 1)
    s = jnp.where((row >= col)[None, :, :], s, -jnp.inf)

    # numerically-stable softmax; EUP approximate reciprocal for the denominator
    s = s - jnp.max(s, axis=-1, keepdims=True)
    p = jnp.exp(s)
    p = p * pl.reciprocal(jnp.sum(p, axis=-1, keepdims=True), approx=True)

    y = jnp.einsum('hts,hsd->htd', p.astype(bf16), v.astype(bf16),
                   preferred_element_type=jnp.float32)                       # (nh, T, hd)
    y = y.transpose(1, 0, 2).reshape(T, C)                                   # back to (T, C)

    y = jnp.dot(y.astype(bf16), wpr_ref[...],
                preferred_element_type=jnp.float32) + bpr_ref[...]
    x1 = x + y                                                               # first residual

    # ---------------- MLP branch ----------------
    h2 = _layernorm(x1, ln2w_ref[...], ln2b_ref[...])
    u = jnp.dot(h2.astype(bf16), wfc_ref[...],
                preferred_element_type=jnp.float32) + bfc_ref[...]           # (T, 4C) f32
    g = jax.nn.gelu(u, approximate=True)                                     # tanh GELU (f32)
    m = jnp.dot(g.astype(bf16), wp2_ref[...],
                preferred_element_type=jnp.float32) + bp2_ref[...]

    o_ref[0] = (x1 + m).astype(o_ref.dtype)                                  # second residual


def gpt_block(x, params, n_head):
    B, T, C = x.shape
    # weights / biases / LN params: whole-array, VMEM-resident (no pipelining buffers)
    resident = pl.BlockSpec(memory_space=pltpu.MemorySpace.VMEM)
    in_specs = [pl.BlockSpec((1, T, C), lambda b: (b, 0, 0))] + [resident] * len(params)
    out_spec = pl.BlockSpec((1, T, C), lambda b: (b, 0, 0))

    return pl.pallas_call(
        functools.partial(block_kernel, n_head),
        out_shape=jax.ShapeDtypeStruct((B, T, C), x.dtype),
        grid_spec=pltpu.PrefetchScalarGridSpec(
            num_scalar_prefetch=0,
            grid=(B,),
            in_specs=in_specs,
            out_specs=out_spec,
        ),
        compiler_params=pltpu.CompilerParams(
            dimension_semantics=("parallel",)),
    )(x, *params)


def block_ref(x, params, n_head):
    """Pure-JAX reference mirroring the kernel math (bf16 matmul operands, f32 accum)."""
    (ln1w, ln1b, wqkv, bqkv, wpr, bpr, ln2w, ln2b, wfc, bfc, wp2, bp2) = params
    B, T, C = x.shape
    nh = n_head
    hd = C // nh
    bf16 = jnp.bfloat16

    def ln(v, w, b):
        mu = jnp.mean(v, axis=-1, keepdims=True)
        var = jnp.mean((v - mu) ** 2, axis=-1, keepdims=True)
        return (v - mu) * jax.lax.rsqrt(var + LN_EPS) * w + b

    h = ln(x, ln1w, ln1b)
    qkv = jnp.einsum('btc,cd->btd', h.astype(bf16), wqkv,
                     preferred_element_type=jnp.float32) + bqkv
    q, k, v = jnp.split(qkv, 3, axis=-1)
    q = q.reshape(B, T, nh, hd).transpose(0, 2, 1, 3)
    k = k.reshape(B, T, nh, hd).transpose(0, 2, 1, 3)
    v = v.reshape(B, T, nh, hd).transpose(0, 2, 1, 3)
    s = jnp.einsum('bhtd,bhsd->bhts', q.astype(bf16), k.astype(bf16),
                   preferred_element_type=jnp.float32) / math.sqrt(hd)
    mask = jnp.tril(jnp.ones((T, T), bool))
    s = jnp.where(mask, s, -jnp.inf)
    p = jax.nn.softmax(s, axis=-1)
    y = jnp.einsum('bhts,bhsd->bhtd', p.astype(bf16), v.astype(bf16),
                   preferred_element_type=jnp.float32)
    y = y.transpose(0, 2, 1, 3).reshape(B, T, C)
    y = jnp.einsum('btc,cd->btd', y.astype(bf16), wpr,
                   preferred_element_type=jnp.float32) + bpr
    x1 = x + y
    h2 = ln(x1, ln2w, ln2b)
    u = jnp.einsum('btc,cd->btd', h2.astype(bf16), wfc,
                   preferred_element_type=jnp.float32) + bfc
    g = jax.nn.gelu(u, approximate=True)
    m = jnp.einsum('btc,cd->btd', g.astype(bf16), wp2,
                   preferred_element_type=jnp.float32) + bp2
    return x1 + m


def init_params(key, n_embd):
    C = n_embd
    ks = jax.random.split(key, 6)
    std = 0.02
    wdt = jnp.bfloat16   # matmul operands in bf16; biases / LN params stay f32
    params = (
        jnp.ones((1, C), jnp.float32),                                           # ln_1 weight
        jnp.zeros((1, C), jnp.float32),                                          # ln_1 bias
        (std * jax.random.normal(ks[0], (C, 3 * C), jnp.float32)).astype(wdt),   # c_attn W (in,out)
        std * jax.random.normal(ks[1], (1, 3 * C), jnp.float32),                 # c_attn b
        (std * jax.random.normal(ks[2], (C, C), jnp.float32)).astype(wdt),       # attn c_proj W
        jnp.zeros((1, C), jnp.float32),                                          # attn c_proj b
        jnp.ones((1, C), jnp.float32),                                           # ln_2 weight
        jnp.zeros((1, C), jnp.float32),                                          # ln_2 bias
        (std * jax.random.normal(ks[3], (C, 4 * C), jnp.float32)).astype(wdt),   # mlp c_fc W
        std * jax.random.normal(ks[4], (1, 4 * C), jnp.float32),                 # mlp c_fc b
        (std * jax.random.normal(ks[5], (4 * C, C), jnp.float32)).astype(wdt),   # mlp c_proj W
        jnp.zeros((1, C), jnp.float32),                                          # mlp c_proj b
    )
    return params


if __name__ == "__main__":
    # Small, lane-dense shapes consistent with the module: B=2, T=16, C=128 (n_embd), 4 heads.
    B, T, C, NH = 2, 16, 128, 4
    key = jax.random.PRNGKey(0)
    kx, kp = jax.random.split(key)
    x = jax.random.normal(kx, (B, T, C), jnp.float32)
    params = init_params(kp, C)

    out = gpt_block(x, params, NH)
    jax.block_until_ready(out)
    assert out.shape == (B, T, C) and out.dtype == jnp.float32
    assert bool(jnp.all(jnp.isfinite(out)))

    ref = block_ref(x, params, NH)
    jax.block_until_ready(ref)
    assert bool(jnp.allclose(out, ref, atol=3e-2, rtol=3e-2)), \
        f"max abs diff {float(jnp.max(jnp.abs(out - ref)))}"

    print("KERNEL_OK")
</pallas_src>

<mosaic_0001>
module attributes {stable_mosaic.version = 11 : i64} {
  func.func @block_kernel(%arg0: i32, %arg1: memref<1x16x128xf32, #tpu.memory_space<vmem>>, %arg2: memref<1x128xf32, #tpu.memory_space<vmem>>, %arg3: memref<1x128xf32, #tpu.memory_space<vmem>>, %arg4: memref<128x384xbf16, #tpu.memory_space<vmem>>, %arg5: memref<1x384xf32, #tpu.memory_space<vmem>>, %arg6: memref<128x128xbf16, #tpu.memory_space<vmem>>, %arg7: memref<1x128xf32, #tpu.memory_space<vmem>>, %arg8: memref<1x128xf32, #tpu.memory_space<vmem>>, %arg9: memref<1x128xf32, #tpu.memory_space<vmem>>, %arg10: memref<128x512xbf16, #tpu.memory_space<vmem>>, %arg11: memref<1x512xf32, #tpu.memory_space<vmem>>, %arg12: memref<512x128xbf16, #tpu.memory_space<vmem>>, %arg13: memref<1x128xf32, #tpu.memory_space<vmem>>, %arg14: memref<1x16x128xf32, #tpu.memory_space<vmem>>) attributes {dimension_semantics = [#tpu.dimension_semantics<parallel>], iteration_bounds = array<i64: 2>, scalar_prefetch = 0 : i64, scratch_operands = 0 : i64, tpu.core_type = #tpu.core_type<tc>, window_params = [{transform_indices = @transform_0, window_bounds = array<i64: 1, 16, 128>}, {pipeline_mode = #tpu.pipeline_mode<synchronous>, transform_indices = @transform_1, window_bounds = array<i64: 1, 128>}, {pipeline_mode = #tpu.pipeline_mode<synchronous>, transform_indices = @transform_2, window_bounds = array<i64: 1, 128>}, {pipeline_mode = #tpu.pipeline_mode<synchronous>, transform_indices = @transform_3, window_bounds = array<i64: 128, 384>}, {pipeline_mode = #tpu.pipeline_mode<synchronous>, transform_indices = @transform_4, window_bounds = array<i64: 1, 384>}, {pipeline_mode = #tpu.pipeline_mode<synchronous>, transform_indices = @transform_5, window_bounds = array<i64: 128, 128>}, {pipeline_mode = #tpu.pipeline_mode<synchronous>, transform_indices = @transform_6, window_bounds = array<i64: 1, 128>}, {pipeline_mode = #tpu.pipeline_mode<synchronous>, transform_indices = @transform_7, window_bounds = array<i64: 1, 128>}, {pipeline_mode = #tpu.pipeline_mode<synchronous>, transform_indices = @transform_8, window_bounds = array<i64: 1, 128>}, {pipeline_mode = #tpu.pipeline_mode<synchronous>, transform_indices = @transform_9, window_bounds = array<i64: 128, 512>}, {pipeline_mode = #tpu.pipeline_mode<synchronous>, transform_indices = @transform_10, window_bounds = array<i64: 1, 512>}, {pipeline_mode = #tpu.pipeline_mode<synchronous>, transform_indices = @transform_11, window_bounds = array<i64: 512, 128>}, {pipeline_mode = #tpu.pipeline_mode<synchronous>, transform_indices = @transform_12, window_bounds = array<i64: 1, 128>}, {transform_indices = @transform_13, window_bounds = array<i64: 1, 16, 128>}]} {
    %c0 = arith.constant 0 : index
    %c0_0 = arith.constant 0 : index
    %c0_1 = arith.constant 0 : index
    %0 = vector.load %arg1[%c0, %c0_0, %c0_1] : memref<1x16x128xf32, #tpu.memory_space<vmem>>, vector<1x16x128xf32>
    %1 = vector.shape_cast %0 : vector<1x16x128xf32> to vector<16x128xf32>
    %c0_2 = arith.constant 0 : index
    %c0_3 = arith.constant 0 : index
    %2 = vector.load %arg2[%c0_2, %c0_3] : memref<1x128xf32, #tpu.memory_space<vmem>>, vector<1x128xf32>
    %c0_4 = arith.constant 0 : index
    %c0_5 = arith.constant 0 : index
    %3 = vector.load %arg3[%c0_4, %c0_5] : memref<1x128xf32, #tpu.memory_space<vmem>>, vector<1x128xf32>
    %cst = arith.constant dense<0.000000e+00> : vector<16xf32>
    %4 = vector.multi_reduction <add>, %1, %cst [1] : vector<16x128xf32> to vector<16xf32>
    %5 = vector.shape_cast %4 : vector<16xf32> to vector<16x1xf32>
    %cst_6 = arith.constant 1.280000e+02 : f32
    %6 = vector.broadcast %cst_6 : f32 to vector<16x1xf32>
    %7 = arith.divf %5, %6 : vector<16x1xf32>
    %8 = arith.mulf %1, %1 : vector<16x128xf32>
    %cst_7 = arith.constant dense<0.000000e+00> : vector<16xf32>
    %9 = vector.multi_reduction <add>, %8, %cst_7 [1] : vector<16x128xf32> to vector<16xf32>
    %10 = vector.shape_cast %9 : vector<16xf32> to vector<16x1xf32>
    %cst_8 = arith.constant 1.280000e+02 : f32
    %11 = vector.broadcast %cst_8 : f32 to vector<16x1xf32>
    %12 = arith.divf %10, %11 : vector<16x1xf32>
    %13 = arith.mulf %7, %7 : vector<16x1xf32>
    %14 = arith.subf %12, %13 : vector<16x1xf32>
    %15 = vector.broadcast %7 : vector<16x1xf32> to vector<16x128xf32>
    %16 = arith.subf %1, %15 : vector<16x128xf32>
    %cst_9 = arith.constant 9.99999974E-6 : f32
    %17 = vector.broadcast %cst_9 : f32 to vector<16x1xf32>
    %18 = arith.addf %14, %17 : vector<16x1xf32>
    %19 = math.rsqrt %18 : vector<16x1xf32>
    %20 = vector.broadcast %19 : vector<16x1xf32> to vector<16x128xf32>
    %21 = arith.mulf %16, %20 : vector<16x128xf32>
    %22 = vector.broadcast %2 : vector<1x128xf32> to vector<16x128xf32>
    %23 = arith.mulf %21, %22 : vector<16x128xf32>
    %24 = vector.broadcast %3 : vector<1x128xf32> to vector<16x128xf32>
    %25 = arith.addf %23, %24 : vector<16x128xf32>
    %26 = arith.truncf %25 : vector<16x128xf32> to vector<16x128xbf16>
    %c0_10 = arith.constant 0 : index
    %c0_11 = arith.constant 0 : index
    %27 = vector.load %arg4[%c0_10, %c0_11] : memref<128x384xbf16, #tpu.memory_space<vmem>>, vector<128x384xbf16>
    %cst_12 = arith.constant dense<0.000000e+00> : vector<16x384xf32>
    %28 = tpu.matmul %26, %27, %cst_12 {dimension_numbers = #tpu.dot_dimension_numbers<[1], [0], [0], [1], [0, 0, 1, 1], [], []>} : vector<16x128xbf16>, vector<128x384xbf16>, vector<16x384xf32> -> vector<16x384xf32>
    %c0_13 = arith.constant 0 : index
    %c0_14 = arith.constant 0 : index
    %29 = vector.load %arg5[%c0_13, %c0_14] : memref<1x384xf32, #tpu.memory_space<vmem>>, vector<1x384xf32>
    %30 = vector.broadcast %29 : vector<1x384xf32> to vector<16x384xf32>
    %31 = arith.addf %28, %30 : vector<16x384xf32>
    %32 = vector.shape_cast %31 : vector<16x384xf32> to vector<16x12x32xf32>
    %33 = tpu.transpose %32, [1, 0, 2] : vector<16x12x32xf32> -> vector<12x16x32xf32>
    %34 = vector.extract_strided_slice %33 {offsets = [0, 0, 0], sizes = [4, 16, 32], strides = [1, 1, 1]} : vector<12x16x32xf32> to vector<4x16x32xf32>
    %35 = vector.extract_strided_slice %33 {offsets = [4, 0, 0], sizes = [4, 16, 32], strides = [1, 1, 1]} : vector<12x16x32xf32> to vector<4x16x32xf32>
    %36 = vector.extract_strided_slice %33 {offsets = [8, 0, 0], sizes = [4, 16, 32], strides = [1, 1, 1]} : vector<12x16x32xf32> to vector<4x16x32xf32>
    %37 = arith.truncf %34 : vector<4x16x32xf32> to vector<4x16x32xbf16>
    %38 = arith.truncf %35 : vector<4x16x32xf32> to vector<4x16x32xbf16>
    "tpu.trace_start"() <{level = 10 : i32, message = "htd,hsd->hts"}> : () -> ()
    %cst_15 = arith.constant dense<0.000000e+00> : vector<4x16x16xf32>
    %39 = tpu.matmul %37, %38, %cst_15 {dimension_numbers = #tpu.dot_dimension_numbers<[2], [2], [1], [1], [0, 0, 0, 1, 1, 1], [0], [0]>} : vector<4x16x32xbf16>, vector<4x16x32xbf16>, vector<4x16x16xf32> -> vector<4x16x16xf32>
    "tpu.trace_stop"() : () -> ()
    %cst_16 = arith.constant 0.176776692 : f32
    %40 = vector.broadcast %cst_16 : f32 to vector<4x16x16xf32>
    %41 = arith.mulf %39, %40 : vector<4x16x16xf32>
    %42 = tpu.iota {dimensions = array<i32: 0>} : vector<16x16xi32>
    %43 = tpu.iota {dimensions = array<i32: 1>} : vector<16x16xi32>
    %44 = arith.cmpi sge, %42, %43 : vector<16x16xi32>
    %45 = vector.shape_cast %44 : vector<16x16xi1> to vector<1x16x16xi1>
    %cst_17 = arith.constant 0xFF800000 : f32
    %46 = vector.shape_cast %45 : vector<1x16x16xi1> to vector<1x16x16xi1>
    %47 = vector.broadcast %46 : vector<1x16x16xi1> to vector<4x16x16xi1>
    %48 = vector.broadcast %cst_17 : f32 to vector<4x16x16xf32>
    %49 = arith.select %47, %41, %48 : vector<4x16x16xi1>, vector<4x16x16xf32>
    %cst_18 = arith.constant dense<0xFF800000> : vector<4x16xf32>
    %50 = vector.multi_reduction <maximumf>, %49, %cst_18 [2] : vector<4x16x16xf32> to vector<4x16xf32>
    %51 = vector.shape_cast %50 : vector<4x16xf32> to vector<4x16x1xf32>
    %52 = vector.broadcast %51 : vector<4x16x1xf32> to vector<4x16x16xf32>
    %53 = arith.subf %49, %52 : vector<4x16x16xf32>
    %54 = math.exp %53 : vector<4x16x16xf32>
    %cst_19 = arith.constant dense<0.000000e+00> : vector<4x16xf32>
    %55 = vector.multi_reduction <add>, %54, %cst_19 [2] : vector<4x16x16xf32> to vector<4x16xf32>
    %56 = vector.shape_cast %55 : vector<4x16xf32> to vector<4x16x1xf32>
    %57 = tpu.reciprocal %56 {approx = true} : vector<4x16x1xf32> -> vector<4x16x1xf32>
    %58 = vector.broadcast %57 : vector<4x16x1xf32> to vector<4x16x16xf32>
    %59 = arith.mulf %54, %58 : vector<4x16x16xf32>
    %60 = arith.truncf %59 : vector<4x16x16xf32> to vector<4x16x16xbf16>
    %61 = arith.truncf %36 : vector<4x16x32xf32> to vector<4x16x32xbf16>
    "tpu.trace_start"() <{level = 10 : i32, message = "hts,hsd->htd"}> : () -> ()
    %cst_20 = arith.constant dense<0.000000e+00> : vector<4x16x32xf32>
    %62 = tpu.matmul %60, %61, %cst_20 {dimension_numbers = #tpu.dot_dimension_numbers<[2], [1], [1], [2], [0, 0, 0, 1, 1, 2], [0], [0]>} : vector<4x16x16xbf16>, vector<4x16x32xbf16>, vector<4x16x32xf32> -> vector<4x16x32xf32>
    "tpu.trace_stop"() : () -> ()
    %63 = tpu.transpose %62, [1, 0, 2] : vector<4x16x32xf32> -> vector<16x4x32xf32>
    %64 = vector.shape_cast %63 : vector<16x4x32xf32> to vector<16x128xf32>
    %65 = arith.truncf %64 : vector<16x128xf32> to vector<16x128xbf16>
    %c0_21 = arith.constant 0 : index
    %c0_22 = arith.constant 0 : index
    %66 = vector.load %arg6[%c0_21, %c0_22] : memref<128x128xbf16, #tpu.memory_space<vmem>>, vector<128x128xbf16>
    %cst_23 = arith.constant dense<0.000000e+00> : vector<16x128xf32>
    %67 = tpu.matmul %65, %66, %cst_23 {dimension_numbers = #tpu.dot_dimension_numbers<[1], [0], [0], [1], [0, 0, 1, 1], [], []>} : vector<16x128xbf16>, vector<128x128xbf16>, vector<16x128xf32> -> vector<16x128xf32>
    %c0_24 = arith.constant 0 : index
    %c0_25 = arith.constant 0 : index
    %68 = vector.load %arg7[%c0_24, %c0_25] : memref<1x128xf32, #tpu.memory_space<vmem>>, vector<1x128xf32>
    %69 = vector.broadcast %68 : vector<1x128xf32> to vector<16x128xf32>
    %70 = arith.addf %67, %69 : vector<16x128xf32>
    %71 = arith.addf %1, %70 : vector<16x128xf32>
    %c0_26 = arith.constant 0 : index
    %c0_27 = arith.constant 0 : index
    %72 = vector.load %arg8[%c0_26, %c0_27] : memref<1x128xf32, #tpu.memory_space<vmem>>, vector<1x128xf32>
    %c0_28 = arith.constant 0 : index
    %c0_29 = arith.constant 0 : index
    %73 = vector.load %arg9[%c0_28, %c0_29] : memref<1x128xf32, #tpu.memory_space<vmem>>, vector<1x128xf32>
    %cst_30 = arith.constant dense<0.000000e+00> : vector<16xf32>
    %74 = vector.multi_reduction <add>, %71, %cst_30 [1] : vector<16x128xf32> to vector<16xf32>
    %75 = vector.shape_cast %74 : vector<16xf32> to vector<16x1xf32>
    %cst_31 = arith.constant 1.280000e+02 : f32
    %76 = vector.broadcast %cst_31 : f32 to vector<16x1xf32>
    %77 = arith.divf %75, %76 : vector<16x1xf32>
    %78 = arith.mulf %71, %71 : vector<16x128xf32>
    %cst_32 = arith.constant dense<0.000000e+00> : vector<16xf32>
    %79 = vector.multi_reduction <add>, %78, %cst_32 [1] : vector<16x128xf32> to vector<16xf32>
    %80 = vector.shape_cast %79 : vector<16xf32> to vector<16x1xf32>
    %cst_33 = arith.constant 1.280000e+02 : f32
    %81 = vector.broadcast %cst_33 : f32 to vector<16x1xf32>
    %82 = arith.divf %80, %81 : vector<16x1xf32>
    %83 = arith.mulf %77, %77 : vector<16x1xf32>
    %84 = arith.subf %82, %83 : vector<16x1xf32>
    %85 = vector.broadcast %77 : vector<16x1xf32> to vector<16x128xf32>
    %86 = arith.subf %71, %85 : vector<16x128xf32>
    %cst_34 = arith.constant 9.99999974E-6 : f32
    %87 = vector.broadcast %cst_34 : f32 to vector<16x1xf32>
    %88 = arith.addf %84, %87 : vector<16x1xf32>
    %89 = math.rsqrt %88 : vector<16x1xf32>
    %90 = vector.broadcast %89 : vector<16x1xf32> to vector<16x128xf32>
    %91 = arith.mulf %86, %90 : vector<16x128xf32>
    %92 = vector.broadcast %72 : vector<1x128xf32> to vector<16x128xf32>
    %93 = arith.mulf %91, %92 : vector<16x128xf32>
    %94 = vector.broadcast %73 : vector<1x128xf32> to vector<16x128xf32>
    %95 = arith.addf %93, %94 : vector<16x128xf32>
    %96 = arith.truncf %95 : vector<16x128xf32> to vector<16x128xbf16>
    %c0_35 = arith.constant 0 : index
    %c0_36 = arith.constant 0 : index
    %97 = vector.load %arg10[%c0_35, %c0_36] : memref<128x512xbf16, #tpu.memory_space<vmem>>, vector<128x512xbf16>
    %cst_37 = arith.constant dense<0.000000e+00> : vector<16x512xf32>
    %98 = tpu.matmul %96, %97, %cst_37 {dimension_numbers = #tpu.dot_dimension_numbers<[1], [0], [0], [1], [0, 0, 1, 1], [], []>} : vector<16x128xbf16>, vector<128x512xbf16>, vector<16x512xf32> -> vector<16x512xf32>
    %c0_38 = arith.constant 0 : index
    %c0_39 = arith.constant 0 : index
    %99 = vector.load %arg11[%c0_38, %c0_39] : memref<1x512xf32, #tpu.memory_space<vmem>>, vector<1x512xf32>
    %100 = vector.broadcast %99 : vector<1x512xf32> to vector<16x512xf32>
    %101 = arith.addf %98, %100 : vector<16x512xf32>
    %102 = arith.mulf %101, %101 : vector<16x512xf32>
    %103 = arith.mulf %101, %102 : vector<16x512xf32>
    %cst_40 = arith.constant 4.471500e-02 : f32
    %104 = vector.broadcast %cst_40 : f32 to vector<16x512xf32>
    %105 = arith.mulf %104, %103 : vector<16x512xf32>
    %106 = arith.addf %101, %105 : vector<16x512xf32>
    %cst_41 = arith.constant 0.797884583 : f32
    %107 = vector.broadcast %cst_41 : f32 to vector<16x512xf32>
    %108 = arith.mulf %107, %106 : vector<16x512xf32>
    %109 = math.tanh %108 : vector<16x512xf32>
    %cst_42 = arith.constant 1.000000e+00 : f32
    %110 = vector.broadcast %cst_42 : f32 to vector<16x512xf32>
    %111 = arith.addf %110, %109 : vector<16x512xf32>
    %cst_43 = arith.constant 5.000000e-01 : f32
    %112 = vector.broadcast %cst_43 : f32 to vector<16x512xf32>
    %113 = arith.mulf %112, %111 : vector<16x512xf32>
    %114 = arith.mulf %101, %113 : vector<16x512xf32>
    %115 = arith.truncf %114 : vector<16x512xf32> to vector<16x512xbf16>
    %c0_44 = arith.constant 0 : index
    %c0_45 = arith.constant 0 : index
    %116 = vector.load %arg12[%c0_44, %c0_45] : memref<512x128xbf16, #tpu.memory_space<vmem>>, vector<512x128xbf16>
    %cst_46 = arith.constant dense<0.000000e+00> : vector<16x128xf32>
    %117 = tpu.matmul %115, %116, %cst_46 {dimension_numbers = #tpu.dot_dimension_numbers<[1], [0], [0], [1], [0, 0, 1, 1], [], []>} : vector<16x512xbf16>, vector<512x128xbf16>, vector<16x128xf32> -> vector<16x128xf32>
    %c0_47 = arith.constant 0 : index
    %c0_48 = arith.constant 0 : index
    %118 = vector.load %arg13[%c0_47, %c0_48] : memref<1x128xf32, #tpu.memory_space<vmem>>, vector<1x128xf32>
    %119 = vector.broadcast %118 : vector<1x128xf32> to vector<16x128xf32>
    %120 = arith.addf %117, %119 : vector<16x128xf32>
    %121 = arith.addf %71, %120 : vector<16x128xf32>
    %c0_49 = arith.constant 0 : index
    %c0_50 = arith.constant 0 : index
    %c0_51 = arith.constant 0 : index
    %122 = vector.load %arg14[%c0_49, %c0_50, %c0_51] : memref<1x16x128xf32, #tpu.memory_space<vmem>>, vector<1x16x128xf32>
    %123 = vector.shape_cast %122 : vector<1x16x128xf32> to vector<16x128xf32>
    %124 = vector.shape_cast %121 : vector<16x128xf32> to vector<1x16x128xf32>
    tpu.vector_store %arg14[%c0_49, %c0_50, %c0_51], %124 {strides = array<i32>} : memref<1x16x128xf32, #tpu.memory_space<vmem>>, vector<1x16x128xf32>,
    return
  }
  func.func @transform_0(%arg0: i32) -> (i32, i32, i32) {
    %c0_i32 = arith.constant 0 : i32
    %c0_i32_0 = arith.constant 0 : i32
    %c0_i32_1 = arith.constant 0 : i32
    return %arg0, %c0_i32, %c0_i32_0 : i32, i32, i32
  }
  func.func @transform_1(%arg0: i32) -> (i32, i32) {
    %c0_i32 = arith.constant 0 : i32
    %c0_i32_0 = arith.constant 0 : i32
    %c0_i32_1 = arith.constant 0 : i32
    return %c0_i32, %c0_i32_0 : i32, i32
  }
  func.func @transform_2(%arg0: i32) -> (i32, i32) {
    %c0_i32 = arith.constant 0 : i32
    %c0_i32_0 = arith.constant 0 : i32
    %c0_i32_1 = arith.constant 0 : i32
    return %c0_i32, %c0_i32_0 : i32, i32
  }
  func.func @transform_3(%arg0: i32) -> (i32, i32) {
    %c0_i32 = arith.constant 0 : i32
    %c0_i32_0 = arith.constant 0 : i32
    %c0_i32_1 = arith.constant 0 : i32
    return %c0_i32, %c0_i32_0 : i32, i32
  }
  func.func @transform_4(%arg0: i32) -> (i32, i32) {
    %c0_i32 = arith.constant 0 : i32
    %c0_i32_0 = arith.constant 0 : i32
    %c0_i32_1 = arith.constant 0 : i32
    return %c0_i32, %c0_i32_0 : i32, i32
  }
  func.func @transform_5(%arg0: i32) -> (i32, i32) {
    %c0_i32 = arith.constant 0 : i32
    %c0_i32_0 = arith.constant 0 : i32
    %c0_i32_1 = arith.constant 0 : i32
    return %c0_i32, %c0_i32_0 : i32, i32
  }
  func.func @transform_6(%arg0: i32) -> (i32, i32) {
    %c0_i32 = arith.constant 0 : i32
    %c0_i32_0 = arith.constant 0 : i32
    %c0_i32_1 = arith.constant 0 : i32
    return %c0_i32, %c0_i32_0 : i32, i32
  }
  func.func @transform_7(%arg0: i32) -> (i32, i32) {
    %c0_i32 = arith.constant 0 : i32
    %c0_i32_0 = arith.constant 0 : i32
    %c0_i32_1 = arith.constant 0 : i32
    return %c0_i32, %c0_i32_0 : i32, i32
  }
  func.func @transform_8(%arg0: i32) -> (i32, i32) {
    %c0_i32 = arith.constant 0 : i32
    %c0_i32_0 = arith.constant 0 : i32
    %c0_i32_1 = arith.constant 0 : i32
    return %c0_i32, %c0_i32_0 : i32, i32
  }
  func.func @transform_9(%arg0: i32) -> (i32, i32) {
    %c0_i32 = arith.constant 0 : i32
    %c0_i32_0 = arith.constant 0 : i32
    %c0_i32_1 = arith.constant 0 : i32
    return %c0_i32, %c0_i32_0 : i32, i32
  }
  func.func @transform_10(%arg0: i32) -> (i32, i32) {
    %c0_i32 = arith.constant 0 : i32
    %c0_i32_0 = arith.constant 0 : i32
    %c0_i32_1 = arith.constant 0 : i32
    return %c0_i32, %c0_i32_0 : i32, i32
  }
  func.func @transform_11(%arg0: i32) -> (i32, i32) {
    %c0_i32 = arith.constant 0 : i32
    %c0_i32_0 = arith.constant 0 : i32
    %c0_i32_1 = arith.constant 0 : i32
    return %c0_i32, %c0_i32_0 : i32, i32
  }
  func.func @transform_12(%arg0: i32) -> (i32, i32) {
    %c0_i32 = arith.constant 0 : i32
    %c0_i32_0 = arith.constant 0 : i32
    %c0_i32_1 = arith.constant 0 : i32
    return %c0_i32, %c0_i32_0 : i32, i32
  }
  func.func @transform_13(%arg0: i32) -> (i32, i32, i32) {
    %c0_i32 = arith.constant 0 : i32
    %c0_i32_0 = arith.constant 0 : i32
    %c0_i32_1 = arith.constant 0 : i32
    return %arg0, %c0_i32, %c0_i32_0 : i32, i32, i32
  }
}

</mosaic_0001>

<bundles_post_ra>
// kernel: tpu_custom_call.1
= control target key start
LH: loop header
LB: loop body
LE: loop exit
PB: predicated region body
PF: predicated region fallthrough
CT: control target
= control target key end

     0   :  { %s5399_s0 = inlined_call_operand.hbm [shape: f32[2,16,128], index: 0, kind: input, shape index: {}]   ;;  %s5400_s1 = inlined_call_operand.hbm [shape: f32[1,128], index: 1, kind: input, shape index: {}]   ;;  %s5401_s2 = inlined_call_operand.hbm [shape: f32[1,128], index: 2, kind: input, shape index: {}]   ;;  %s5402_s3 = inlined_call_operand.hbm [shape: bf16[128,384], index: 3, kind: input, shape index: {}]   ;;  %s5403_s4 = inlined_call_operand.vmem [shape: f32[1,384], index: 4, kind: input, shape index: {}]   ;;  %s5404_s5 = inlined_call_operand.hbm [shape: bf16[128,128], index: 5, kind: input, shape index: {}]   ;;  %s5405_s6 = inlined_call_operand.vmem [shape: f32[1,128], index: 6, kind: input, shape index: {}]   ;;  %s5406_s7 = inlined_call_operand.vmem [shape: f32[1,128], index: 7, kind: input, shape index: {}]   ;;  %s5407_s8 = inlined_call_operand.vmem [shape: f32[1,128], index: 8, kind: input, shape index: {}]   ;;  %s5408_s9 = inlined_call_operand.hbm [shape: bf16[128,512], index: 9, kind: input, shape index: {}]   ;;  %s5409_s10 = inlined_call_operand.vmem [shape: f32[1,512], index: 10, kind: input, shape index: {}]   ;;  %s5410_s11 = inlined_call_operand.hbm [shape: bf16[512,128], index: 11, kind: input, shape index: {}]   ;;  %s5411_s12 = inlined_call_operand.vmem [shape: f32[1,128], index: 12, kind: input, shape index: {}]   ;;  %s5412_s13 = inlined_call_operand.hbm [shape: f32[2,16,128], index: 13, kind: output, shape index: {}]  }
   0x1   :  { %5417 = sst [smem:[#allocation20_spill]] %s5400_s1 }
   0x2   :  { %5418 = sst [smem:[#allocation21_spill]] %s5402_s3 }
   0x3   :  { %5419 = sst [smem:[#allocation22_spill]] %s5406_s7 }
   0x4   :  { %5420 = sst [smem:[#allocation23_spill]] %s5407_s8 }
   0x5   :  { %5421 = sst [smem:[#allocation24_spill]] %s5409_s10 }
   0x6   :  { %5422 = sst [smem:[#allocation25_spill]] %s5411_s12 }
   0x7   :  { %5423 = sst [smem:[#allocation26_spill]] %s5412_s13 }
   0x8   :  { %18 = vsyncpa [#allocation3], 0 }
   0x9   :  { %20 = vsyncpa [#allocation3 + $0x1], 0 }
   0xa   :  { %21 = vsyncpa [#allocation6], 0 }
   0xb   :  { %22 = vsyncpa [#allocation9], 0 }
   0xc   :  { %23 = vsyncpa [#allocation12], 0 }
   0xd   :  { %24 = vsyncpa [#allocation4], 0 }
   0xe   :  { %26 = vsyncpa [#allocation4 + $0x1], 0  ;;  %s4578_s25 = smov 0   ;;  %s4580_s26 = smov 0  }
   0xf   :  { %s4582_s27 = smov 0   ;;  %s4584_s28 = smov 0  }
  0x10 LB: > { %s4482_s29 = smov [#allocation5]   ;;  %s4599_s14 = sadd.s32 4294967295, %s4480_s28   ;;  %s4480_s28 = sphi %s4584_s28, %s5453_s28   ;;  %s4476_s27 = sphi %s4582_s27, %s5452_s27   ;;  %s4472_s26 = sphi %s4580_s26, %s5451_s26   ;;  %s4468_s25 = sphi %s4578_s25, %s5450_s25  }
  0x11   : > { %s354_s30 = sshll.u32 %s4482_s29, 4  ;;  %p3559_p0 = scmp.ge.s32.totalorder %s4480_s28, 1  ;;  %s4604_s30 = int_to_ptr.vmem [resolvable:$true] %s354_s30 }
  0x12   : > { %p5414_p1 = scmp.eq.s32.totalorder %s4599_s14, 0  ;;  %p341_p2 = scmp.lt.s32.totalorder %s4480_s28, 3 }
  0x13   : > { %s4483_s16 = smov [#allocation8]   ;;  %s4484_s19 = smov [#allocation11]  }
  0x14   : > { %p4606_p3 = pnand %p3559_p0, %p341_p2  ;;  %s375_s17 = sshll.u32 %s4483_s16, 4  ;;  %s4613_s17 = int_to_ptr.vmem [resolvable:$true] %s375_s17 }
  0x15   : > { %s413_s20 = sshll.u32 %s4484_s19, 4  ;;  %s5426_s1 = sld [smem:[#allocation20_spill]]  ;;  %s4621_s20 = int_to_ptr.vmem [resolvable:$true] %s413_s20 }
  0x16   : > { %s5424_s15 = scalar_select %p4606_p3, 1, 0 }
  0x17   : > { %p3914_p5 = pneg %p4606_p3 }
  0x19   : > { %p4617_p6 = pnand %p3914_p5, %p5414_p1 }
  0x1b   : > { %s4204_s23 = scalar_lea.hbm %s5426_s1, 16  ;;  %p4631_p8 = pneg %p4617_p6 }
  0x1c   : > { %p4205_p7 = scmp.ne.s32.totalorder %s5426_s1, %s4204_s23  ;;  %p4211_p11 = scmp.lt.u32.totalorder %s4204_s23, %s5426_s1 }
  0x1e   : > { %p4207_p9 = pnand %p4631_p8, %p4205_p7 }
  0x20   : > { %p4208_p10 = pneg %p4207_p9 }
  0x22   : > { %p4213_p12 = pnand %p4211_p11, %p4208_p10 }
  0x24   : > { %4216 = shalt.err (!%p4213_p12)
}
  0x25   : > { %s4217_s21 = scalar_lea.vmem %s4604_s30, 16  ;;  %s4224_s22 = scalar_lea.vmem %s4604_s30, 32 }
  0x26   : > { %p4218_p13 = scmp.ne.s32.totalorder %s4604_s30, %s4217_s21  ;;  %p4225_p5 = scmp.lt.s32.totalorder %s4604_s30, %s4604_s30 }
  0x27   : > { %p4226_p7 = scmp.lt.s32.totalorder %s4224_s22, %s4217_s21 }
  0x28   : > { %p4220_p0 = pnand %p4218_p13, %p4631_p8 }
  0x29   : > { %p4227_p9 = por %p4226_p7, %p4225_p5 }
  0x2a   : > { %p4221_p2 = pneg %p4220_p0 }
  0x2c   : > { %p4228_p4 = pnand %p4227_p9, %p4221_p2 }
  0x2e   : > { %4231 = shalt.err (!%p4228_p4)
}
  0x2f   : > { %3917 = dma.hbm_to_vmem [thread:$0]  (!%p4617_p6), %s5426_s1, 16, %s4604_s30, [#allocation6]  }
  0x30   : > { %s5428_s3 = sld [smem:[#allocation21_spill]] }
  0x36   : > { %s4232_s19 = scalar_lea.hbm %s5428_s3, 3072 }
  0x37   : > { %p4233_p10 = scmp.ne.s32.totalorder %s5428_s3, %s4232_s19  ;;  %p4239_p4 = scmp.lt.u32.totalorder %s4232_s19, %s5428_s3 }
  0x39   : > { %p4235_p11 = pnand %p4233_p10, %p4631_p8 }
  0x3b   : > { %p4236_p12 = pneg %p4235_p11 }
  0x3d   : > { %p4241_p13 = pnand %p4239_p4, %p4236_p12 }
  0x3f   : > { %4244 = shalt.err (!%p4241_p13)
}
  0x40   : > { %s4245_s30 = scalar_lea.vmem %s4613_s17, 3072  ;;  %p4253_p7 = scmp.lt.s32.totalorder %s4613_s17, %s4613_s17 }
  0x41   : > { %p4246_p0 = scmp.ne.s32.totalorder %s4613_s17, %s4245_s30  ;;  %p4254_p9 = scmp.lt.s32.totalorder %s4245_s30, %s4245_s30 }
  0x43   : > { %p4248_p2 = pnand %p4246_p0, %p4631_p8  ;;  %p4255_p10 = por %p4254_p9, %p4253_p7 }
  0x45   : > { %p4249_p5 = pneg %p4248_p2 }
  0x47   : > { %p4256_p11 = pnand %p4255_p10, %p4249_p5 }
  0x49   : > { %4259 = shalt.err (!%p4256_p11)
}
  0x4a   : > { %s4485_s10 = smov 192   ;;  %s4486_s12 = smov 12  }
  0x4b   : > { %3923 = dma.hbm_to_vmem [thread:$0]  (!%p4617_p6), %s5428_s3, 3072, %s4613_s17, [#allocation9], %s4485_s10, %s4485_s10, %s4486_s12  }
  0x4c   : > { %s4260_s19 = scalar_lea.hbm %s5408_s9, 4096 }
  0x4d   : > { %p4261_p12 = scmp.ne.s32.totalorder %s5408_s9, %s4260_s19  ;;  %p4267_p0 = scmp.lt.u32.totalorder %s4260_s19, %s5408_s9 }
  0x4f   : > { %p4263_p4 = pnand %p4261_p12, %p4631_p8 }
  0x51   : > { %p4264_p13 = pneg %p4263_p4 }
  0x53   : > { %p4269_p2 = pnand %p4267_p0, %p4264_p13 }
  0x55   : > { %4272 = shalt.err (!%p4269_p2)
}
  0x56   : > { %s4273_s17 = scalar_lea.vmem %s4621_s20, 4096  ;;  %p4281_p10 = scmp.lt.s32.totalorder %s4621_s20, %s4621_s20 }
  0x57   : > { %p4274_p5 = scmp.ne.s32.totalorder %s4621_s20, %s4273_s17  ;;  %p4282_p11 = scmp.lt.s32.totalorder %s4273_s17, %s4273_s17 }
  0x59   : > { %p4276_p7 = pnand %p4274_p5, %p4631_p8  ;;  %p4283_p12 = por %p4282_p11, %p4281_p10 }
  0x5b   : > { %p4277_p9 = pneg %p4276_p7 }
  0x5d   : > { %p4284_p4 = pnand %p4283_p12, %p4277_p9 }
  0x5f   : > { %4287 = shalt.err (!%p4284_p4)
}
  0x60   : > { %s4487_s10 = smov 256   ;;  %s4488_s1 = smov 16  }
  0x61   : > { %3929 = dma.hbm_to_vmem [thread:$0]  (!%p4617_p6), %s5408_s9, 4096, %s4621_s20, [#allocation12], %s4487_s10, %s4487_s10, %s4488_s1  }
  0x62   : > { %s4489_s23 = smov [#allocation7]   ;;  %s4490_s29 = smov [#allocation10]  }
  0x63   : > { %s365_s24 = sshll.u32 %s4489_s23, 4  ;;  %s391_s19 = sshll.u32 %s4490_s29, 4  ;;  %s366_s24 = int_to_ptr.vmem [resolvable:$true] %s365_s24  ;;  %s392_s19 = int_to_ptr.vmem [resolvable:$true] %s391_s19 }
  0x64   : > { %s4288_s30 = scalar_lea.hbm %s5401_s2, 16 }
  0x65   : > { %p4289_p13 = scmp.ne.s32.totalorder %s5401_s2, %s4288_s30  ;;  %p4295_p5 = scmp.lt.u32.totalorder %s4288_s30, %s5401_s2 }
  0x67   : > { %p4291_p0 = pnand %p4289_p13, %p4631_p8 }
  0x69   : > { %p4292_p2 = pneg %p4291_p0 }
  0x6b   : > { %p4297_p7 = pnand %p4295_p5, %p4292_p2 }
  0x6d   : > { %4300 = shalt.err (!%p4297_p7)
}
  0x6e   : > { %s4301_s20 = scalar_lea.vmem %s366_s24, 16  ;;  %s4308_s10 = scalar_lea.vmem %s366_s24, 32 }
  0x6f   : > { %p4302_p9 = scmp.ne.s32.totalorder %s366_s24, %s4301_s20  ;;  %p4309_p12 = scmp.lt.s32.totalorder %s366_s24, %s366_s24 }
  0x70   : > { %p4310_p4 = scmp.lt.s32.totalorder %s4308_s10, %s4301_s20 }
  0x71   : > { %p4304_p10 = pnand %p4302_p9, %p4631_p8 }
  0x72   : > { %p4311_p1 = por %p4310_p4, %p4309_p12 }
  0x73   : > { %p4305_p11 = pneg %p4304_p10 }
  0x75   : > { %p4312_p3 = pnand %p4311_p1, %p4305_p11 }
  0x77   : > { %4315 = shalt.err (!%p4312_p3)
}
  0x78   : > { %3920 = dma.hbm_to_vmem [thread:$0]  (!%p4617_p6), %s5401_s2, 16, %s366_s24, [#allocation6]  }
  0x79   : > { %s4316_s12 = scalar_lea.hbm %s5404_s5, 1024 }
  0x7a   : > { %p4317_p13 = scmp.ne.s32.totalorder %s5404_s5, %s4316_s12  ;;  %p4323_p3 = scmp.lt.u32.totalorder %s4316_s12, %s5404_s5 }
  0x7c   : > { %p4319_p0 = pnand %p4317_p13, %p4631_p8 }
  0x7e   : > { %p4320_p1 = pneg %p4319_p0 }
  0x80   : > { %p4325_p2 = pnand %p4323_p3, %p4320_p1 }
  0x82   : > { %4328 = shalt.err (!%p4325_p2)
}
  0x83   : > { %s4329_s22 = scalar_lea.vmem %s392_s19, 1024  ;;  %p4337_p10 = scmp.lt.s32.totalorder %s392_s19, %s392_s19 }
  0x84   : > { %p4330_p5 = scmp.ne.s32.totalorder %s392_s19, %s4329_s22  ;;  %p4338_p11 = scmp.lt.s32.totalorder %s4329_s22, %s4329_s22 }
  0x86   : > { %p4332_p7 = pnand %p4330_p5, %p4631_p8  ;;  %p4339_p12 = por %p4338_p11, %p4337_p10 }
  0x88   : > { %p4333_p9 = pneg %p4332_p7 }
  0x8a   : > { %p4340_p4 = pnand %p4339_p12, %p4333_p9 }
  0x8c   : > { %4343 = shalt.err (!%p4340_p4)
}
  0x8d   : > { %s4491_s24 = smov 64   ;;  %s4492_s30 = smov 4  }
  0x8e   : > { %3926 = dma.hbm_to_vmem [thread:$0]  (!%p4617_p6), %s5404_s5, 1024, %s392_s19, [#allocation9], %s4491_s24, %s4491_s24, %s4492_s30  }
  0x8f   : > { %s4493_s10 = smov [#allocation13]   ;;  %s4344_s8 = scalar_lea.hbm %s5410_s11, 4096 }
  0x90   : > { %s429_s3 = sshll.u32 %s4493_s10, 4  ;;  %p4345_p13 = scmp.ne.s32.totalorder %s5410_s11, %s4344_s8  ;;  %s430_s3 = int_to_ptr.vmem [resolvable:$true] %s429_s3 }
  0x91   : > { %p4351_p3 = scmp.lt.u32.totalorder %s4344_s8, %s5410_s11 }
  0x92   : > { %p4347_p0 = pnand %p4345_p13, %p4631_p8 }
  0x94   : > { %p4348_p1 = pneg %p4347_p0 }
  0x96   : > { %p4353_p2 = pnand %p4351_p3, %p4348_p1 }
  0x98   : > { %4356 = shalt.err (!%p4353_p2)
}
  0x99   : > { %s4357_s19 = scalar_lea.vmem %s430_s3, 4096  ;;  %p4365_p10 = scmp.lt.s32.totalorder %s430_s3, %s430_s3 }
  0x9a   : > { %p4358_p5 = scmp.ne.s32.totalorder %s430_s3, %s4357_s19  ;;  %p4366_p11 = scmp.lt.s32.totalorder %s4357_s19, %s4357_s19 }
  0x9c   : > { %p4360_p7 = pnand %p4358_p5, %p4631_p8  ;;  %p4367_p12 = por %p4366_p11, %p4365_p10 }
  0x9e   : > { %p4361_p9 = pneg %p4360_p7 }
  0xa0   : > { %p4368_p4 = pnand %p4367_p12, %p4361_p9 }
  0xa2   : > { %4371 = shalt.err (!%p4368_p4)
}
  0xa3   : > { %3932 = dma.hbm_to_vmem [thread:$0]  (!%p4617_p6), %s5410_s11, 4096, %s430_s3, [#allocation12], %s4491_s24, %s4491_s24, %s4492_s30  }
  0xa4   : > { %s3558_s16 = sadd.s32 4294967294, %s4480_s28   ;;  %s4755_s18 = sadd.s32 1, %s4480_s28  }
  0xa5   : > { %s36_s17 = ssub.s32 %s4480_s28, %s4755_s18  ;;  %s39_s20 = sadd.s32 1, %s4476_s27 }
  0xa6   : > { %p37_p8 = scmp.eq.s32.totalorder %s36_s17, 0  ;;  %p46_p13 = scmp.ne.s32.totalorder %s4476_s27, %s4472_s26 }
  0xa7   : > { %p47_p0 = scmp.eq.s32.totalorder %s4480_s28, 0  ;;  %p52_p1 = scmp.ne.s32.totalorder %s4472_s26, %s4468_s25 }
  0xa8   : > { %s4766_s10 = scalar_select %p37_p8, %s4476_s27, %s39_s20  }
  0xa9   : > { %p4768_p3 = por %p47_p0, %p46_p13  ;;  %p5430_p2 = scmp.eq.s32.totalorder %s4599_s14, 0 }
  0xaa   : > { %p328_p5 = scmp.eq.s32.totalorder %s4599_s14, 1  ;;  %p334_p7 = scmp.eq.s32.totalorder %s3558_s16, 1 }
  0xab   : > { %p4774_p6 = por %p5430_p2, %p52_p1  ;;  %p3947_p9 = scmp.lt.s32.totalorder %s4480_s28, 2 }
  0xac   : > { %s446_s30 = sand.u32 1, %s4476_s27   ;;  %p4781_p10 = por %p328_p5, %p46_p13 }
  0xad   : > { %p4785_p11 = por %p334_p7, %p52_p1  ;;  %s3567_s8 = sshll.u32 %s446_s30, 4 }
  0xae   : > { %s5432_s3 = scalar_select %p4781_p10, 1, 0 }
  0xaf   : > { %s5433_s7 = scalar_select %p4785_p11, 1, 0 }
  0xb0   : > { %s3718_s12 = sshll.u32 %s4480_s28, 8  ;;  %s450_s19 = scalar_lea.vmem [#allocation2], %s3567_s8 }
  0xb1   : > { %s4793_s29 = scalar_lea.hbm %s5399_s0, %s3718_s12  ;;  %s457_s21 = sshll.u32 %s450_s19, 4  ;;  %s4795_s21 = int_to_ptr.vmem [resolvable:$true] %s457_s21 }
  0xb2   : > { %p4799_p12 = pnand %p3947_p9, %p4768_p3  ;;  %s4803_s16 = scalar_lea.sflag [#allocation3], %s446_s30 }
  0xb3   : > { %s4372_s17 = scalar_lea.hbm %s4793_s29, 256  ;;  %s4377_s1 = scalar_lea.hbm %s5399_s0, 512 }
  0xb4   : > { %p4373_p4 = scmp.ne.s32.totalorder %s4793_s29, %s4372_s17  ;;  %p4374_p8 = pneg %p4799_p12 }
  0xb5   : > { %p4378_p1 = scmp.lt.u32.totalorder %s4793_s29, %s5399_s0  ;;  %p4379_p3 = scmp.lt.u32.totalorder %s4377_s1, %s4372_s17 }
  0xb6   : > { %p4375_p13 = pnand %p4374_p8, %p4373_p4  ;;  %p4381_p5 = scmp.lt.u32.totalorder %s4372_s17, %s4793_s29 }
  0xb7   : > { %p4380_p2 = por %p4379_p3, %p4378_p1 }
  0xb8   : > { %p4376_p0 = pneg %p4375_p13 }
  0xb9   : > { %p4382_p7 = por %p4381_p5, %p4380_p2 }
  0xbb   : > { %p4383_p9 = pnand %p4382_p7, %p4376_p0 }
  0xbd   : > { %4386 = shalt.err (!%p4383_p9)
}
  0xbe   : > { %s4387_s30 = scalar_lea.vmem %s4795_s21, 256  ;;  %s4494_s23 = smov [#allocation2]  }
  0xbf   : > { %p4388_p4 = scmp.ne.s32.totalorder %s4795_s21, %s4387_s30  ;;  %s4392_s19 = sshll.u32 %s4494_s23, 4  ;;  %s4393_s19 = int_to_ptr.vmem [resolvable:$false] %s4392_s19 }
  0xc0   : > { %s4394_s20 = scalar_lea.vmem %s4393_s19, 512  ;;  %p4395_p10 = scmp.lt.s32.totalorder %s4795_s21, %s4393_s19 }
  0xc1   : > { %p4390_p13 = pnand %p4388_p4, %p4374_p8  ;;  %p4396_p1 = scmp.lt.s32.totalorder %s4394_s20, %s4387_s30 }
  0xc3   : > { %p4391_p11 = pneg %p4390_p13  ;;  %p4397_p3 = por %p4396_p1, %p4395_p10 }
  0xc5   : > { %p4398_p2 = pnand %p4397_p3, %p4391_p11 }
  0xc7   : > { %4401 = shalt.err (!%p4398_p2)
}
  0xc8   : > { %s4495_s17 = smov 128   ;;  %s4496_s8 = smov 8  }
  0xc9   : > { %3936 = dma.hbm_to_vmem [thread:$0]  (!%p4799_p12), %s4793_s29, 256, %s4795_s21, %s4803_s16, %s4495_s17, %s4495_s17, %s4496_s8  }
  0xca   : > { %p5435_p8 = scmp.ne.s32.totalorder %s5424_s15, 0 }
  0xcb   : > { %s4834_s1 = sand.u32 (!%p5435_p8), 1, %s4472_s26  }
  0xcc   : > { %469 = sbr.rel (%p5435_p8) target bundleno = 2619 (0xa3b), region = 72  ;;  %s3571_s12 = sshll.u32 (!%p5435_p8), %s4834_s1, 4 }
  0xcd   : > { %s472_s13 = scalar_lea.sflag (!%p5435_p8), [#allocation3], %s4834_s1  ;;  %s4840_s30 = scalar_lea.vmem (!%p5435_p8), [#allocation2], %s3571_s12 }
  0xd3   : > { %4447 = dma.done.wait (%p4774_p6), %s472_s13, 256  }
  0xd4   : > { %4449 = vsyncadd (%p4774_p6), %s472_s13, 4294967040  ;;  %p5436_p10 = scmp.eq.s32.totalorder %s4599_s14, 0 }
  0xd6   : > { %4451 = dma.done.wait (%p5436_p10), [#allocation6], 32   ;;  %p5437_p11 = pmov %p5436_p10 }
  0xd7   : > { %p5438_p12 = pmov %p5436_p10 }
  0xd8   : > { %4453 = vsyncadd (%p5437_p11), [#allocation6], 4294967264 }
  0xd9   : > { %4455 = dma.done.wait (%p5438_p12), [#allocation9], 4096   ;;  %p5439_p0 = pmov %p5436_p10 }
  0xdb   : > { %4457 = vsyncadd (%p5439_p0), [#allocation9], 4294963200  ;;  %p5440_p5 = pmov %p5439_p0 }
  0xdc   : > { %p5441_p7 = pmov %p5439_p0 }
  0xdd   : > { %4459 = dma.done.wait (%p5440_p5), [#allocation12], 8192  }
  0xde   : > { %4461 = vsyncadd (%p5441_p7), [#allocation12], 4294959104  ;;  %v4497_v0 = vmov 0.0   ;;  %v4860_v1 = vld [vmem:[%s4840_s30] sm:$0xff]  ;;  %v4863_v2 = vld [vmem:[%s4840_s30 + $0x8] sm:$0xff]  ;;  %v4498_v26 = vmov 0   ;;  %v625_v57 = vlaneseq }
  0xdf   : > { %3798 = vmatprep.subr.bf16.mxu1 %v4497_v0  ;;  %547 = vadd.xlane.f32.xlu0 %v4860_v1  ;;  %v554_v3 = vmul.f32 %v4860_v1, %v4860_v1  ;;  %v4026_v4 = vld [vmem:[#allocation8 + $0x4] ss:$12 sps:$4 sm:$0xff]   ;;  %v555_v5 = vmul.f32 %v4863_v2, %v4863_v2  ;;  %v4028_v6 = vld [vmem:[#allocation8] ss:$12 sps:$4 sm:$0xff]   ;;  %v4029_v7 = vld [vmem:[#allocation8 + $0x8] ss:$12 sps:$4 sm:$0xff]  }
  0xe0   : > { %768 = vmatprep.subr.bf16.mxu0 %v4026_v4  ;;  %3799 = vmatpush3.bf16.msra.mxu1 %v4029_v7  ;;  %v4030_v8 = vld [vmem:[#allocation8 + $0x1c] ss:$12 sps:$4 sm:$0xff]   ;;  %v4032_v9 = vld [vmem:[#allocation8 + $0x18] ss:$12 sps:$4 sm:$0xff]   ;;  %v4033_v10 = vld [vmem:[#allocation8 + $0x20] ss:$12 sps:$4 sm:$0xff]  }
  0xe1   : > { %556 = vadd.xlane.f32.xlu1 %v554_v3  ;;  %769 = vmatpush1.bf16.msra.mxu0 %v4028_v6  ;;  %v4034_v11 = vld [vmem:[#allocation8 + $0x34] ss:$12 sps:$4 sm:$0xff]   ;;  %v4036_v12 = vld [vmem:[#allocation8 + $0x30] ss:$12 sps:$4 sm:$0xff]   ;;  %v4037_v13 = vld [vmem:[#allocation8 + $0x38] ss:$12 sps:$4 sm:$0xff]  }
  0xe2   : > { %3800 = vmatprep.subr.bf16.mxu1 %v4497_v0  ;;  %770 = vmatprep.subr.bf16.mxu0 %v4030_v8  ;;  %v4038_v14 = vld [vmem:[#allocation8 + $0x4c] ss:$12 sps:$4 sm:$0xff]   ;;  %v4040_v15 = vld [vmem:[#allocation8 + $0x48] ss:$12 sps:$4 sm:$0xff]   ;;  %v4041_v16 = vld [vmem:[#allocation8 + $0x50] ss:$12 sps:$4 sm:$0xff]  }
  0xe3   : > { %549 = vadd.xlane.f32.xlu0 %v4863_v2  ;;  %v4042_v17 = vld [vmem:[#allocation8 + $0x64] ss:$12 sps:$4 sm:$0xff]   ;;  %v4044_v18 = vld [vmem:[#allocation8 + $0x60] ss:$12 sps:$4 sm:$0xff]   ;;  %v4045_v19 = vld [vmem:[#allocation8 + $0x68] ss:$12 sps:$4 sm:$0xff]   ;;  %800 = vmatprep.mubr.bf16.mxu0 %v4498_v26 }
  0xe4   : > { %3801 = vmatpush3.bf16.msra.mxu1 %v4033_v10  ;;  %v4046_v20 = vld [vmem:[#allocation8 + $0x7c] ss:$12 sps:$4 sm:$0xff]   ;;  %v4048_v21 = vld [vmem:[#allocation8 + $0x78] ss:$12 sps:$4 sm:$0xff]   ;;  %v4049_v22 = vld [vmem:[#allocation8 + $0x80] ss:$12 sps:$4 sm:$0xff]  }
  0xe5   : > { %558 = vadd.xlane.f32.xlu1 %v555_v5  ;;  %771 = vmatpush1.bf16.msra.mxu0 %v4032_v9  ;;  %v4050_v23 = vld [vmem:[#allocation8 + $0x94] ss:$12 sps:$4 sm:$0xff]   ;;  %v4052_v24 = vld [vmem:[#allocation8 + $0x90] ss:$12 sps:$4 sm:$0xff]   ;;  %v4053_v25 = vld [vmem:[#allocation8 + $0x98] ss:$12 sps:$4 sm:$0xff]  }
  0xe6   : > { %3802 = vmatprep.subr.bf16.mxu1 %v4497_v0  ;;  %772 = vmatprep.subr.bf16.mxu0 %v4034_v11  ;;  %vm4499_vm0 = vmmov 0   ;;  %v4054_v27 = vld [vmem:[#allocation8 + $0xac] ss:$12 sps:$4 sm:$0xff]   ;;  %v4056_v28 = vld [vmem:[#allocation8 + $0xa8] ss:$12 sps:$4 sm:$0xff]   ;;  %v4890_v58 = vshrl.u32 %v625_v57, 7 }
  0xe7   : > { %3814 = vmatprep.mubr.msk.bf16.mxu1 %vm4499_vm0, %v4497_v0  ;;  %v4057_v29 = vld [vmem:[#allocation8 + $0xb0] ss:$12 sps:$4 sm:$0xff]   ;;  %s4500_s29 = smov 96   ;;  %s4501_s21 = smov 64   ;;  %vm1736_vm1 = vcmask 261120   ;;  %vm1952_vm3 = vcmask 130048  }
  0xe8   : > { %3803 = vmatpush3.bf16.msra.mxu1 %v4037_v13  ;;  %v3579_v47 = vld [vmem:[#allocation5] ss:$0 sm:$0xff]  ;;  %v3580_v52 = vld [vmem:[#allocation7] ss:$0 sm:$0xff]  ;;  %v627_v59 = vsub.s32 0, %v4890_v58  ;;  %v631_v61 = vsub.s32 1, %v4890_v58 }
  0xe9   : > { %773 = vmatpush1.bf16.msra.mxu0 %v4036_v12  ;;  %3804 = vmatprep.subr.bf16.mxu1 %v4497_v0  ;;  %v4896_v60 = vld [vmem:[%s5403_s4] sm:$0x7]  ;;  %s4502_s22 = smov 32   ;;  %v4503_v13 = vmov 1983009808   ;;  %vm2523_vm5 = vcmask 523264  }
  0xea   : > { %774 = vmatprep.subr.bf16.mxu0 %v4038_v14  ;;  %v628_v62 = vrot.slane %v4896_v60, %v627_v59  ;;  %v632_v63 = vrot.slane %v4896_v60, %v631_v61  ;;  %v915_v14 = vunpack.c.l.s4 %v4503_v13  ;;  %vm2526_vm6 = vcmask 785408   ;;  %s5442_s17 = sld [smem:[#allocation22_spill]]  ;;  %s5445_s16 = sld [smem:[#allocation25_spill]] }
  0xeb   : > { %s541_s23 = scalar_lea.vmem [#allocation14], %s3571_s12  ;;  %s3719_s20 = sshll.u32 %s4599_s14, 8 }
  0xec   : > { %3805 = vmatpush3.bf16.msra.mxu1 %v4041_v16  ;;  %s3428_s19 = sshll.u32 %s541_s23, 4  ;;  %s5446_s13 = sld [smem:[#allocation26_spill]]  ;;  %s5349_s19 = int_to_ptr.vmem [resolvable:$true] %s3428_s19 }
  0xed   : > { %775 = vmatpush1.bf16.msra.mxu0 %v4040_v15  ;;  %3806 = vmatprep.subr.bf16.mxu1 %v4497_v0  ;;  %s3415_s12 = scalar_lea.sflag [#allocation4], %s4834_s1  ;;  %s4402_s15 = scalar_lea.vmem %s5349_s19, 256 }
  0xee   : > { %776 = vmatprep.subr.bf16.mxu0 %v4042_v17  ;;  %v4504_v17 = vmov 1934713408   ;;  %p4403_p6 = scmp.ne.s32.totalorder %s5349_s19, %s4402_s15  ;;  %p5447_p9 = scmp.ne.s32.totalorder %s5432_s3, 0 }
  0xef   : > { %s4505_s14 = smov [#allocation14]  }
  0xf0   : > { %3807 = vmatpush3.bf16.msra.mxu1 %v4045_v19  ;;  %v916_v19 = vunpack.c.0.s8 %v915_v14  ;;  %p4404_p4 = pnand %p4403_p6, %p5447_p9  ;;  %s4406_s24 = sshll.u32 %s4505_s14, 4  ;;  %s4407_s24 = int_to_ptr.vmem [resolvable:$false] %s4406_s24 }
  0xf1   : > { %777 = vmatpush1.bf16.msra.mxu0 %v4044_v18  ;;  %3808 = vmatprep.subr.bf16.mxu1 %v4497_v0  ;;  %v979_v18 = vunpack.c.l.s4 %v4504_v17  ;;  %p4409_p1 = scmp.lt.s32.totalorder %s5349_s19, %s4407_s24 }
  0xf2   : > { %778 = vmatprep.subr.bf16.mxu0 %v4046_v20  ;;  %p4405_p13 = pneg %p4404_p4 }
  0xf4   : > { %3809 = vmatpush3.bf16.msra.mxu1 %v4049_v22  ;;  %v980_v22 = vunpack.c.0.s8 %v979_v18 }
  0xf5   : > { %779 = vmatpush1.bf16.msra.mxu0 %v4048_v21  ;;  %3810 = vmatprep.subr.bf16.mxu1 %v4497_v0 }
  0xf6   : > { %780 = vmatprep.subr.bf16.mxu0 %v4050_v23  ;;  %v4934_v23 = vsub.s32 %v916_v19, %v4890_v58 }
  0xf8   : > { %3811 = vmatpush3.bf16.msra.mxu1 %v4053_v25 }
  0xf9   : > { %781 = vmatpush1.bf16.msra.mxu0 %v4052_v24  ;;  %3812 = vmatprep.subr.bf16.mxu1 %v4497_v0 }
  0xfa   : > { %782 = vmatprep.subr.bf16.mxu0 %v4054_v27 }
  0xfc   : > { %3813 = vmatpush3.bf16.msra.mxu1 %v4057_v29 }
  0xfd   : > { %783 = vmatpush1.bf16.msra.mxu0 %v4056_v28  ;;  %3818 = vmatprep.subr.bf16.mxu1 %v4497_v0 }
  0xfe   : > { %3842 = vmatprep.subr.bf16.mxu0 %v4497_v0 }
 0x16c   : > { %v548_v30 = vpop.xlane.xlu0 %547 }
 0x16d   : > { %v552_v31 = vmul.f32 0.0078125, %v548_v30 }
 0x16e   : > { %v557_v32 = vpop.xlane.xlu1 %556 }
 0x16f   : > { %v562_v33 = vmul.f32 %v552_v31, %v552_v31  ;;  %v560_v34 = vmul.f32 0.0078125, %v557_v32  ;;  %v566_v44 = vsub.f32 %v4860_v1, %v552_v31  ;;  %v4937_v31 = vsub.s32 %v980_v22, %v4890_v58 }
 0x170   : > { %v550_v35 = vpop.xlane.xlu0 %549 }
 0x171   : > { %v564_v36 = vsub.f32 %v560_v34, %v562_v33  ;;  %v553_v37 = vmul.f32 0.0078125, %v550_v35 }
 0x172   : > { %v559_v38 = vpop.xlane.xlu1 %558 }
 0x173   : > { %v568_v39 = vadd.f32 1e-05, %v564_v36  ;;  %v563_v40 = vmul.f32 %v553_v37, %v553_v37  ;;  %v561_v41 = vmul.f32 0.0078125, %v559_v38  ;;  %v567_v48 = vsub.f32 %v4863_v2, %v553_v37 }
 0x175   : > { %4146 = vrsqrt.f32 %v568_v39  ;;  %v565_v42 = vsub.f32 %v561_v41, %v563_v40 }
 0x177   : > { %v569_v43 = vadd.f32 1e-05, %v565_v42 }
 0x179   : > { %4148 = vrsqrt.f32 %v569_v43 }
 0x17f   : > { %v4147_v45 = vpop.eup %4146 }
 0x180   : > { %v572_v46 = vmul.f32 %v4147_v45, %v566_v44 }
 0x182   : > { %v580_v51 = vmul.f32 %v3579_v47, %v572_v46 }
 0x183   : > { %v4149_v49 = vpop.eup %4148 }
 0x184   : > { %v573_v50 = vmul.f32 %v4149_v49, %v567_v48  ;;  %v588_v54 = vadd.f32 %v3580_v52, %v580_v51 }
 0x186   : > { %v581_v53 = vmul.f32 %v3579_v47, %v573_v50 }
 0x188   : > { %v589_v55 = vadd.f32 %v3580_v52, %v581_v53 }
 0x18a   : > { %v590_v56 = vpack.c.bf16 %v589_v55, %v588_v54 }
 0x18c   : > { %801 = vmatmul.mubr.bf16.vlgmr.msra.gmra.mrb[0].mxu0 %v590_v56  ;;  %3815 = vmatmul.mubr.bf16.vlgmr.msra.gmra.mrb[0].mxu1 %v590_v56 }
 0x18d   : > { %3820 = vmatprep.mubr.msk.bf16.mxu1 %vm4499_vm0, %v4497_v0  ;;  %3844 = vmatprep.mubr.msk.bf16.mxu0 %vm4499_vm0, %v4497_v0 }
 0x25f   : > { %v802_v1 = vpop.f32.mrb[0].mxu0  ;;  %v4905_v2 = vpop.f32.mrb[0].mxu1 }
 0x260   : > { %v4907_v3 = vadd.f32 %v802_v1, %v628_v62  ;;  %v804_v4 = vpop.f32.mrb[1].mxu0  ;;  %v3816_v5 = vpop.f32.mrb[1].mxu1 }
 0x261   : > { %v805_v6 = vadd.f32 %v804_v4, %v632_v63  ;;  %v806_v7 = vpop.f32.mrb[2].mxu0  ;;  %v4909_v8 = vpop.f32.mrb[2].mxu1 }
 0x262   : > { %v808_v9 = vpop.f32.mrb[3].mxu0  ;;  %v3817_v10 = vpop.f32.mrb[3].mxu1  ;;  %854 = vrot.lane.b32.xlu0 %v4907_v3, %s4500_s29  ;;  %v4914_v11 = vadd.f32 %v806_v7, %v628_v62 }
 0x263   : > { %880 = vrot.lane.b32.xlu1 %v805_v6, %s4501_s21  ;;  %v809_v12 = vadd.f32 %v808_v9, %v632_v63 }
 0x266   : > { %874 = vrot.lane.b32.xlu0 %v805_v6, %s4500_s29 }
 0x267   : > { %856 = vrot.lane.b32.xlu1 %v4914_v11, %s4500_s29 }
 0x26a   : > { %886 = vrot.lane.b32.xlu0 %v805_v6, %s4502_s22 }
 0x26b   : > { %876 = vrot.lane.b32.xlu1 %v809_v12, %s4500_s29 }
 0x26e   : > { %860 = vrot.lane.b32.xlu0 %v4907_v3, %s4501_s21 }
 0x26f   : > { %882 = vrot.lane.b32.xlu1 %v809_v12, %s4501_s21 }
 0x272   : > { %866 = vrot.lane.b32.xlu0 %v4907_v3, %s4502_s22 }
 0x273   : > { %888 = vrot.lane.b32.xlu1 %v809_v12, %s4502_s22 }
 0x277   : > { %862 = vrot.lane.b32.xlu1 %v4914_v11, %s4501_s21 }
 0x27b   : > { %868 = vrot.lane.b32.xlu1 %v4914_v11, %s4502_s22 }
 0x2d4   : > { %v855_v15 = vpop.permute.xlu0 %854 }
 0x2d5   : > { %v881_v16 = vpop.permute.xlu1 %880 }
 0x2d6   : > { %v944_v24 = vcombine.low %v805_v6, %v881_v16  ;;  %v945_v25 = vcombine.high %v805_v6, %v881_v16 }
 0x2d8   : > { %v875_v20 = vpop.permute.xlu0 %874  ;;  %v952_v32 = vrot.slane %v944_v24, %v4934_v23  ;;  %v959_v33 = vrot.slane %v945_v25, %v4934_v23 }
 0x2d9   : > { %v4931_v21 = vpop.permute.xlu1 %856 }
 0x2dc   : > { %v887_v27 = vpop.permute.xlu0 %886 }
 0x2dd   : > { %v960_v28 = vcombine.low %v875_v20, %v887_v27  ;;  %v961_v29 = vcombine.high %v875_v20, %v887_v27  ;;  %v877_v30 = vpop.permute.xlu1 %876 }
 0x2df   : > { %v968_v34 = vrot.slane %v960_v28, %v4934_v23  ;;  %v975_v35 = vrot.slane %v961_v29, %v4934_v23 }
 0x2e0   : > { %v861_v36 = vpop.permute.xlu0 %860 }
 0x2e1   : > { %v1008_v37 = vcombine.low %v952_v32, %v968_v34  ;;  %v1009_v38 = vcombine.high %v952_v32, %v968_v34  ;;  %v1024_v39 = vcombine.low %v959_v33, %v975_v35  ;;  %v1025_v40 = vcombine.high %v959_v33, %v975_v35  ;;  %v883_v41 = vpop.permute.xlu1 %882 }
 0x2e2   : > { %v912_v42 = vcombine.low %v4907_v3, %v861_v36  ;;  %v913_v43 = vcombine.high %v4907_v3, %v861_v36  ;;  %v1148_v44 = vcombine.low %v809_v12, %v883_v41  ;;  %v1149_v45 = vcombine.high %v809_v12, %v883_v41 }
 0x2e3   : > { %v1016_v46 = vrot.slane %v1008_v37, %v4937_v31  ;;  %v1023_v47 = vrot.slane %v1009_v38, %v4937_v31  ;;  %v1032_v48 = vrot.slane %v1024_v39, %v4937_v31  ;;  %v1039_v49 = vrot.slane %v1025_v40, %v4937_v31 }
 0x2e4   : > { %v867_v50 = vpop.permute.xlu0 %866  ;;  %v920_v3 = vrot.slane %v912_v42, %v4934_v23  ;;  %v927_v4 = vrot.slane %v913_v43, %v4934_v23  ;;  %v1156_v5 = vrot.slane %v1148_v44, %v4934_v23  ;;  %v1163_v6 = vrot.slane %v1149_v45, %v4934_v23 }
 0x2e5   : > { %v3606_v51 = vcombine.low %v1016_v46, %v1023_v47  ;;  %v3608_v52 = vcombine.high %v1016_v46, %v1023_v47  ;;  %v3610_v53 = vcombine.low %v1032_v48, %v1039_v49  ;;  %v3612_v54 = vcombine.high %v1032_v48, %v1039_v49  ;;  %v889_v55 = vpop.permute.xlu1 %888 }
 0x2e6   : > { %v928_v56 = vcombine.low %v855_v15, %v867_v50  ;;  %v929_v62 = vcombine.high %v855_v15, %v867_v50  ;;  %v1164_v63 = vcombine.low %v877_v30, %v889_v55  ;;  %v1165_v1 = vcombine.high %v877_v30, %v889_v55 }
 0x2e7   : > { %v4958_v13 = vrot.slane %v3606_v51, %v4934_v23  ;;  %v4961_v14 = vrot.slane %v3608_v52, %v4934_v23  ;;  %v4964_v15 = vrot.slane %v3610_v53, %v4934_v23  ;;  %v4967_v16 = vrot.slane %v3612_v54, %v4934_v23 }
 0x2e8   : > { %v936_v7 = vrot.slane %v928_v56, %v4934_v23  ;;  %v943_v9 = vrot.slane %v929_v62, %v4934_v23  ;;  %v1172_v10 = vrot.slane %v1164_v63, %v4934_v23  ;;  %v1179_v12 = vrot.slane %v1165_v1, %v4934_v23 }
 0x2e9   : > { %v863_v22 = vpop.permute.xlu1 %862  ;;  %v1400_v47 = vcombine.low %v4958_v13, %v4961_v14  ;;  %v1432_v48 = vcombine.low %v4964_v15, %v4967_v16 }
 0x2ea   : > { %v976_v17 = vcombine.low %v920_v3, %v936_v7  ;;  %v977_v18 = vcombine.high %v920_v3, %v936_v7  ;;  %v992_v19 = vcombine.low %v927_v4, %v943_v9  ;;  %v993_v20 = vcombine.high %v927_v4, %v943_v9 }
 0x2eb   : > { %v1212_v24 = vcombine.low %v1156_v5, %v1172_v10  ;;  %v1213_v25 = vcombine.high %v1156_v5, %v1172_v10  ;;  %v1228_v27 = vcombine.low %v1163_v6, %v1179_v12  ;;  %v1229_v28 = vcombine.high %v1163_v6, %v1179_v12 }
 0x2ec   : > { %v984_v29 = vrot.slane %v976_v17, %v4937_v31  ;;  %v991_v30 = vrot.slane %v977_v18, %v4937_v31  ;;  %v1000_v32 = vrot.slane %v992_v19, %v4937_v31  ;;  %v1007_v33 = vrot.slane %v993_v20, %v4937_v31 }
 0x2ed   : > { %v1220_v34 = vrot.slane %v1212_v24, %v4937_v31  ;;  %v1227_v35 = vrot.slane %v1213_v25, %v4937_v31  ;;  %v1236_v36 = vrot.slane %v1228_v27, %v4937_v31  ;;  %v1243_v37 = vrot.slane %v1229_v28, %v4937_v31  ;;  %v869_v46 = vpop.permute.xlu1 %868 }
 0x2ee   : > { %v3605_v42 = vcombine.low %v984_v29, %v991_v30  ;;  %v3607_v43 = vcombine.high %v984_v29, %v991_v30  ;;  %v3609_v44 = vcombine.low %v1000_v32, %v1007_v33  ;;  %v3611_v45 = vcombine.high %v1000_v32, %v1007_v33 }
 0x2ef   : > { %v3614_v38 = vcombine.low %v1220_v34, %v1227_v35  ;;  %v3616_v39 = vcombine.high %v1220_v34, %v1227_v35  ;;  %v3618_v40 = vcombine.low %v1236_v36, %v1243_v37  ;;  %v3620_v41 = vcombine.high %v1236_v36, %v1243_v37 }
 0x2f0   : > { %v1116_v53 = vcombine.low %v4914_v11, %v863_v22  ;;  %v1117_v54 = vcombine.high %v4914_v11, %v863_v22  ;;  %v1132_v55 = vcombine.low %v4931_v21, %v869_v46  ;;  %v1133_v56 = vcombine.high %v4931_v21, %v869_v46 }
 0x2f1   : > { %v4982_v49 = vrot.slane %v3614_v38, %v4934_v23  ;;  %v1487_v50 = vrot.slane %v3616_v39, %v4934_v23  ;;  %v1503_v51 = vrot.slane %v3618_v40, %v4934_v23  ;;  %v1519_v52 = vrot.slane %v3620_v41, %v4934_v23 }
 0x2f2   : > { %v4992_v62 = vrot.slane %v3605_v42, %v4934_v23  ;;  %v4995_v63 = vrot.slane %v3607_v43, %v4934_v23  ;;  %v4998_v1 = vrot.slane %v3609_v44, %v4934_v23  ;;  %v5001_v3 = vrot.slane %v3611_v45, %v4934_v23 }
 0x2f3   : > { %v1124_v4 = vrot.slane %v1116_v53, %v4934_v23  ;;  %v1131_v11 = vrot.slane %v1117_v54, %v4934_v23  ;;  %v1140_v5 = vrot.slane %v1132_v55, %v4934_v23  ;;  %v1147_v21 = vrot.slane %v1133_v56, %v4934_v23 }
 0x2f4   : > { %v1408_v6 = vrot.slane %v1400_v47, %v4937_v31  ;;  %v1440_v7 = vrot.slane %v1432_v48, %v4937_v31  ;;  %v1536_v9 = vcombine.low %v4982_v49, %v1487_v50  ;;  %v1568_v10 = vcombine.low %v1503_v51, %v1519_v52 }
 0x2f5   : > { %v1180_v12 = vcombine.low %v1124_v4, %v1140_v5  ;;  %v1181_v17 = vcombine.high %v1124_v4, %v1140_v5  ;;  %v1196_v18 = vcombine.low %v1131_v11, %v1147_v21  ;;  %v1197_v19 = vcombine.high %v1131_v11, %v1147_v21 }
 0x2f6   : > { %v1544_v20 = vrot.slane %v1536_v9, %v4937_v31  ;;  %v1576_v22 = vrot.slane %v1568_v10, %v4937_v31  ;;  %v1384_v29 = vcombine.low %v4992_v62, %v4995_v63  ;;  %v1416_v30 = vcombine.low %v4998_v1, %v5001_v3 }
 0x2f7   : > { %v1188_v24 = vrot.slane %v1180_v12, %v4937_v31  ;;  %v1195_v25 = vrot.slane %v1181_v17, %v4937_v31  ;;  %v1204_v27 = vrot.slane %v1196_v18, %v4937_v31  ;;  %v1211_v28 = vrot.slane %v1197_v19, %v4937_v31 }
 0x2f8   : > { %v1452_v32 = vcombine.low %v1408_v6, %v1440_v7  ;;  %v1588_v33 = vcombine.low %v1544_v20, %v1576_v22  ;;  %v1392_v43 = vrot.slane %v1384_v29, %v4937_v31  ;;  %v1424_v44 = vrot.slane %v1416_v30, %v4937_v31 }
 0x2f9   : > { %v3613_v34 = vcombine.low %v1188_v24, %v1195_v25  ;;  %v3615_v35 = vcombine.high %v1188_v24, %v1195_v25  ;;  %v3617_v36 = vcombine.low %v1204_v27, %v1211_v28  ;;  %v3619_v37 = vcombine.high %v1204_v27, %v1211_v28 }
 0x2fa   : > { %v1732_v38 = vpack.c.bf16 %v1588_v33, %v1452_v32  ;;  %v1589_v48 = vcombine.high %v1544_v20, %v1576_v22  ;;  %v1537_v53 = vcombine.high %v4982_v49, %v1487_v50  ;;  %v1401_v54 = vcombine.high %v4958_v13, %v4961_v14 }
 0x2fb   : > { %v1464_v39 = vrot.slane %v3613_v34, %v4934_v23  ;;  %v1480_v40 = vrot.slane %v3615_v35, %v4934_v23  ;;  %v1496_v41 = vrot.slane %v3617_v36, %v4934_v23  ;;  %v1512_v42 = vrot.slane %v3619_v37, %v4934_v23 }
 0x2fc   : > { %v1741_v45 = vsel %vm1736_vm1, %v1732_v38, 0  ;;  %v1569_v55 = vcombine.high %v1503_v51, %v1519_v52  ;;  %v1453_v11 = vcombine.high %v1408_v6, %v1440_v7  ;;  %v1433_v5 = vcombine.high %v4964_v15, %v4967_v16 }
 0x2fd   : > { %v1520_v46 = vcombine.low %v1464_v39, %v1480_v40  ;;  %v1552_v47 = vcombine.low %v1496_v41, %v1512_v42  ;;  %3819 = vmatpush3.bf16.xpose.msra.mxu1 %v1741_v45  ;;  %v1448_v21 = vcombine.low %v1392_v43, %v1424_v44  ;;  %v1551_v12 = vrot.slane %v1537_v53, %v4937_v31 }
 0x2fe   : > { %3824 = vmatprep.subr.bf16.mxu1 %v4497_v0  ;;  %v1733_v10 = vpack.c.bf16 %v1589_v48, %v1453_v11  ;;  %v1583_v49 = vrot.slane %v1569_v55, %v4937_v31  ;;  %v1415_v17 = vrot.slane %v1401_v54, %v4937_v31  ;;  %v1447_v13 = vrot.slane %v1433_v5, %v4937_v31 }
 0x2ff   : > { %v1528_v56 = vrot.slane %v1520_v46, %v4937_v31  ;;  %v1560_v4 = vrot.slane %v1552_v47, %v4937_v31  ;;  %v1521_v15 = vcombine.high %v1464_v39, %v1480_v40  ;;  %v1553_v16 = vcombine.high %v1496_v41, %v1512_v42 }
 0x300   : > { %v1788_v14 = vsel %vm1736_vm1, %v1733_v10, 0  ;;  %v1590_v51 = vcombine.low %v1551_v12, %v1583_v49  ;;  %v1454_v6 = vcombine.low %v1415_v17, %v1447_v13  ;;  %v1385_v7 = vcombine.high %v4992_v62, %v4995_v63 }
 0x301   : > { %v1584_v9 = vcombine.low %v1528_v56, %v1560_v4  ;;  %v1585_v52 = vcombine.high %v1528_v56, %v1560_v4  ;;  %v1417_v18 = vcombine.high %v4998_v1, %v5001_v3  ;;  %v1449_v19 = vcombine.high %v1392_v43, %v1424_v44 }
 0x302   : > { %v1734_v20 = vpack.c.bf16 %v1590_v51, %v1454_v6  ;;  %v1535_v22 = vrot.slane %v1521_v15, %v4937_v31  ;;  %v1567_v24 = vrot.slane %v1553_v16, %v4937_v31  ;;  %v1399_v27 = vrot.slane %v1385_v7, %v4937_v31 }
 0x303   : > { %v1728_v50 = vpack.c.bf16 %v1584_v9, %v1448_v21  ;;  %v1729_v25 = vpack.c.bf16 %v1585_v52, %v1449_v19  ;;  %v1431_v28 = vrot.slane %v1417_v18, %v4937_v31  ;;  %v1591_v30 = vcombine.high %v1551_v12, %v1583_v49 }
 0x304   : > { %v1835_v29 = vsel %vm1736_vm1, %v1734_v20, 0  ;;  %v1586_v62 = vcombine.low %v1535_v22, %v1567_v24  ;;  %v1455_v63 = vcombine.high %v1415_v17, %v1447_v13  ;;  %v1587_v34 = vcombine.high %v1535_v22, %v1567_v24 }
 0x305   : > { %3821 = vmatmul.mubr.msk.bf16.vlgmr.msra.gmra.mrb[4].mxu1 %vm1736_vm1, %v1728_v50  ;;  %v1450_v1 = vcombine.low %v1399_v27, %v1431_v28  ;;  %v1451_v35 = vcombine.high %v1399_v27, %v1431_v28  ;;  %v1937_v37 = vand.u32 127, %v625_v57  ;;  %v1935_v38 = vadd.s32 8, %v4890_v58 }
 0x306   : > { %3825 = vmatpush3.bf16.xpose.msra.mxu1 %v1788_v14  ;;  %3826 = vmatprep.mubr.msk.bf16.mxu1 %vm4499_vm0, %v4497_v0  ;;  %v1735_v3 = vpack.c.bf16 %v1591_v30, %v1455_v63  ;;  %v635_v27 = vsub.s32 2, %v4890_v58 }
 0x307   : > { %3830 = vmatprep.subr.bf16.mxu1 %v4497_v0  ;;  %v1730_v32 = vpack.c.bf16 %v1586_v62, %v1450_v1  ;;  %v1731_v36 = vpack.c.bf16 %v1587_v34, %v1451_v35  ;;  %vm1938_vm2 = vcmp.ge.s32.totalorder %v4890_v58, %v1937_v37  ;;  %vm1939_vm4 = vcmp.ge.s32.totalorder %v1935_v38, %v1937_v37 }
 0x308   : > { %v1882_v33 = vsel %vm1736_vm1, %v1735_v3, 0  ;;  %v636_v28 = vrot.slane %v4896_v60, %v635_v27 }
 0x30a   : > { %v5102_v30 = vadd.f32 %v4905_v2, %v636_v28 }
 0x30d   : > { %3827 = vmatmul.mubr.msk.bf16.vlgmr.msra.gmra.mrb[8].mxu1 %vm1736_vm1, %v1729_v25 }
 0x30e   : > { %3831 = vmatpush3.bf16.xpose.msra.mxu1 %v1835_v29  ;;  %3832 = vmatprep.mubr.msk.bf16.mxu1 %vm4499_vm0, %v4497_v0  ;;  %v5097_v29 = vadd.f32 %v4909_v8, %v636_v28 }
 0x30f   : > { %3836 = vmatprep.subr.bf16.mxu1 %v4497_v0 }
 0x315   : > { %3833 = vmatmul.mubr.msk.bf16.vlgmr.msra.gmra.mrb[12].mxu1 %vm1736_vm1, %v1730_v32 }
 0x316   : > { %3837 = vmatpush3.bf16.xpose.msra.mxu1 %v1882_v33  ;;  %3838 = vmatprep.mubr.msk.bf16.mxu1 %vm4499_vm0, %v4497_v0 }
 0x317   : > { %3848 = vmatprep.subr.bf16.mxu1 %v4497_v0 }
 0x31d   : > { %3839 = vmatmul.mubr.msk.bf16.vlgmr.msra.gmra.mrb[16].mxu1 %vm1736_vm1, %v1731_v36 }
 0x31e   : > { %3850 = vmatprep.mubr.msk.bf16.mxu1 %vm4499_vm0, %v4497_v0 }
 0x3d8   : > { %v1777_v39 = vpop.f32.mrb[4].mxu1 }
 0x3d9   : > { %v1925_v40 = vmul.f32 0.17677669, %v1777_v39  ;;  %v3822_v41 = vpop.f32.mrb[5].mxu1 }
 0x3da   : > { %v1780_v42 = vpop.f32.mrb[6].mxu1 }
 0x3db   : > { %v1926_v43 = vmul.f32 0.17677669, %v1780_v42  ;;  %v3823_v44 = vpop.f32.mrb[7].mxu1  ;;  %v1944_v45 = vsel %vm1938_vm2, %v1925_v40, -inf }
 0x3dc   : > { %v1953_v46 = vsel %vm1952_vm3, %v1944_v45, -inf }
 0x3dd   : > { %1954 = vmax.xlane.f32.xlu0 %v1953_v46  ;;  %v1945_v57 = vsel %vm1939_vm4, %v1926_v43, -inf }
 0x3de   : > { %v1956_v47 = vsel %vm1952_vm3, %v1945_v57, -inf }
 0x3df   : > { %1957 = vmax.xlane.f32.xlu1 %v1956_v47 }
 0x3e0   : > { %v1824_v48 = vpop.f32.mrb[8].mxu1 }
 0x3e1   : > { %v1927_v53 = vmul.f32 0.17677669, %v1824_v48  ;;  %v3828_v54 = vpop.f32.mrb[9].mxu1 }
 0x3e2   : > { %v1827_v55 = vpop.f32.mrb[10].mxu1 }
 0x3e3   : > { %v1928_v56 = vmul.f32 0.17677669, %v1827_v55  ;;  %v3829_v4 = vpop.f32.mrb[11].mxu1  ;;  %v1946_v11 = vsel %vm1938_vm2, %v1927_v53, -inf }
 0x3e4   : > { %v1959_v5 = vsel %vm1952_vm3, %v1946_v11, -inf }
 0x3e5   : > { %1960 = vmax.xlane.f32.xlu0 %v1959_v5  ;;  %v1947_v21 = vsel %vm1939_vm4, %v1928_v56, -inf }
 0x3e6   : > { %v1962_v10 = vsel %vm1952_vm3, %v1947_v21, -inf }
 0x3e8   : > { %v1871_v9 = vpop.f32.mrb[12].mxu1 }
 0x3e9   : > { %v1929_v12 = vmul.f32 0.17677669, %v1871_v9  ;;  %1963 = vmax.xlane.f32.xlu0 %v1962_v10  ;;  %v3834_v49 = vpop.f32.mrb[13].mxu1 }
 0x3ea   : > { %v1874_v50 = vpop.f32.mrb[14].mxu1 }
 0x3eb   : > { %v1930_v17 = vmul.f32 0.17677669, %v1874_v50  ;;  %v3835_v13 = vpop.f32.mrb[15].mxu1  ;;  %v1948_v14 = vsel %vm1938_vm2, %v1929_v12, -inf }
 0x3ec   : > { %v1965_v51 = vsel %vm1952_vm3, %v1948_v14, -inf }
 0x3ed   : > { %1966 = vmax.xlane.f32.xlu0 %v1965_v51  ;;  %v5082_v15 = vsel %vm1939_vm4, %v1930_v17, -inf }
 0x3ee   : > { %v1968_v16 = vsel %vm1952_vm3, %v5082_v15, -inf }
 0x3ef   : > { %1969 = vmax.xlane.f32.xlu1 %v1968_v16 }
 0x3f0   : > { %v1918_v52 = vpop.f32.mrb[16].mxu1 }
 0x3f1   : > { %v1931_v6 = vmul.f32 0.17677669, %v1918_v52  ;;  %v3840_v7 = vpop.f32.mrb[17].mxu1 }
 0x3f2   : > { %v1921_v18 = vpop.f32.mrb[18].mxu1 }
 0x3f3   : > { %v1932_v19 = vmul.f32 0.17677669, %v1921_v18  ;;  %v3841_v20 = vpop.f32.mrb[19].mxu1  ;;  %v1950_v22 = vsel %vm1938_vm2, %v1931_v6, -inf }
 0x3f4   : > { %v1971_v24 = vsel %vm1952_vm3, %v1950_v22, -inf }
 0x3f5   : > { %1972 = vmax.xlane.f32.xlu0 %v1971_v24  ;;  %v5090_v25 = vsel %vm1939_vm4, %v1932_v19, -inf }
 0x3f6   : > { %v1974_v60 = vsel %vm1952_vm3, %v5090_v25, -inf }
 0x400   : > { %896 = vrot.lane.b32.xlu1 %v5097_v29, %s4500_s29 }
 0x404   : > { %900 = vrot.lane.b32.xlu1 %v5102_v30, %s4501_s21 }
 0x40b   : > { %894 = vrot.lane.b32.xlu0 %v5102_v30, %s4500_s29 }
 0x40f   : > { %906 = vrot.lane.b32.xlu0 %v5102_v30, %s4502_s22 }
 0x428   : > { %1975 = vmax.xlane.f32.xlu1 %v1974_v60 }
 0x439   : > { %902 = vrot.lane.b32.xlu1 %v5097_v29, %s4501_s21 }
 0x46a   : > { %v1955_v8 = vpop.xlane.xlu0 %1954 }
 0x46b   : > { %v1977_v62 = vsub.f32 %v1944_v45, %v1955_v8 }
 0x46c   : > { %v1958_v2 = vpop.xlane.xlu1 %1957 }
 0x46d   : > { %v1985_v63 = vmul.f32 1.442695, %v1977_v62  ;;  %v1978_v1 = vsub.f32 %v1945_v57, %v1958_v2 }
 0x46f   : > { %4150 = vpow2.f32 %v1985_v63  ;;  %v1987_v3 = vmul.f32 1.442695, %v1978_v1 }
 0x471   : > { %4152 = vpow2.f32 %v1987_v3 }
 0x472   : > { %v1961_v32 = vpop.xlane.xlu0 %1960 }
 0x473   : > { %v1979_v33 = vsub.f32 %v1946_v11, %v1961_v32 }
 0x475   : > { %v1989_v34 = vmul.f32 1.442695, %v1979_v33 }
 0x476   : > { %v1964_v35 = vpop.xlane.xlu0 %1963 }
 0x477   : > { %4154 = vpow2.f32 %v1989_v34  ;;  %v1980_v36 = vsub.f32 %v1947_v21, %v1964_v35 }
 0x479   : > { %v5114_v37 = vpop.eup %4150  ;;  %v1991_v38 = vmul.f32 1.442695, %v1980_v36 }
 0x47a   : > { %v1967_v39 = vpop.xlane.xlu0 %1966  ;;  %v2001_v40 = vsel %vm1952_vm3, %v5114_v37, 0.0 }
 0x47b   : > { %v5118_v41 = vpop.eup %4152  ;;  %4156 = vpow2.f32 %v1991_v38  ;;  %v1981_v42 = vsub.f32 %v1948_v14, %v1967_v39  ;;  %2002 = vadd.xlane.f32.xlu0 %v2001_v40 }
 0x47c   : > { %v2004_v43 = vsel %vm1952_vm3, %v5118_v41, 0.0  ;;  %v1970_v5 = vpop.xlane.xlu1 %1969 }
 0x47d   : > { %v1993_v44 = vmul.f32 1.442695, %v1981_v42  ;;  %2005 = vadd.xlane.f32.xlu1 %v2004_v43  ;;  %v1982_v21 = vsub.f32 %v5082_v15, %v1970_v5 }
 0x47f   : > { %4158 = vpow2.f32 %v1993_v44  ;;  %v1995_v9 = vmul.f32 1.442695, %v1982_v21 }
 0x480   : > { %v897_v10 = vpop.permute.xlu1 %896 }
 0x481   : > { %v5122_v45 = vpop.eup %4154 }
 0x482   : > { %v1973_v46 = vpop.xlane.xlu0 %1972  ;;  %v2007_v57 = vsel %vm1952_vm3, %v5122_v45, 0.0 }
 0x483   : > { %v1983_v47 = vsub.f32 %v1950_v22, %v1973_v46  ;;  %2008 = vadd.xlane.f32.xlu0 %v2007_v57 }
 0x484   : > { %v901_v12 = vpop.permute.xlu1 %900 }
 0x485   : > { %v5126_v48 = vpop.eup %4156  ;;  %v1997_v53 = vmul.f32 1.442695, %v1983_v47  ;;  %v1048_v7 = vcombine.low %v5102_v30, %v901_v12  ;;  %v1049_v19 = vcombine.high %v5102_v30, %v901_v12 }
 0x486   : > { %v2010_v54 = vsel %vm1952_vm3, %v5126_v48, 0.0  ;;  %v895_v16 = vpop.permute.xlu0 %894 }
 0x487   : > { %4160 = vpow2.f32 %v1997_v53  ;;  %2011 = vadd.xlane.f32.xlu1 %v2010_v54  ;;  %v1056_v22 = vrot.slane %v1048_v7, %v4934_v23  ;;  %v1063_v28 = vrot.slane %v1049_v19, %v4934_v23 }
 0x488   : > { %4162 = vpow2.f32 %v1995_v9 }
 0x489   : > { %v5130_v55 = vpop.eup %4158 }
 0x48a   : > { %v2013_v56 = vsel %vm1952_vm3, %v5130_v55, 0.0  ;;  %v907_v52 = vpop.permute.xlu0 %906 }
 0x48b   : > { %2014 = vadd.xlane.f32.xlu0 %v2013_v56  ;;  %v1064_v6 = vcombine.low %v895_v16, %v907_v52  ;;  %v1065_v18 = vcombine.high %v895_v16, %v907_v52 }
 0x48d   : > { %v1072_v20 = vrot.slane %v1064_v6, %v4934_v23  ;;  %v1079_v24 = vrot.slane %v1065_v18, %v4934_v23 }
 0x48f   : > { %v1080_v60 = vcombine.low %v1056_v22, %v1072_v20  ;;  %v1081_v8 = vcombine.high %v1056_v22, %v1072_v20  ;;  %v1096_v62 = vcombine.low %v1063_v28, %v1079_v24  ;;  %v1097_v2 = vcombine.high %v1063_v28, %v1079_v24 }
 0x491   : > { %v5134_v4 = vpop.eup %4160  ;;  %v1088_v1 = vrot.slane %v1080_v60, %v4937_v31  ;;  %v1095_v3 = vrot.slane %v1081_v8, %v4937_v31  ;;  %v1104_v30 = vrot.slane %v1096_v62, %v4937_v31  ;;  %v1111_v32 = vrot.slane %v1097_v2, %v4937_v31 }
 0x492   : > { %v2019_v11 = vsel %vm1952_vm3, %v5134_v4, 0.0  ;;  %v5142_v17 = vpop.eup %4162 }
 0x493   : > { %2020 = vadd.xlane.f32.xlu0 %v2019_v11  ;;  %v2016_v14 = vsel %vm1952_vm3, %v5142_v17, 0.0  ;;  %v1592_v34 = vcombine.low %v1088_v1, %v1095_v3  ;;  %v3621_v39 = vcombine.high %v1088_v1, %v1095_v3  ;;  %v1608_v40 = vcombine.low %v1104_v30, %v1111_v32 }
 0x494   : > { %v3622_v42 = vcombine.high %v1104_v30, %v1111_v32 }
 0x495   : > { %v1599_v57 = vrot.slane %v1592_v34, %v4934_v23  ;;  %v1607_v11 = vrot.slane %v3621_v39, %v4934_v23  ;;  %v1615_v5 = vrot.slane %v1608_v40, %v4934_v23 }
 0x496   : > { %v1623_v21 = vrot.slane %v3622_v42, %v4934_v23 }
 0x497   : > { %v1624_v16 = vcombine.low %v1599_v57, %v1607_v11  ;;  %v1625_v62 = vcombine.high %v1599_v57, %v1607_v11 }
 0x498   : > { %908 = vrot.lane.b32.xlu1 %v5097_v29, %s4502_s22  ;;  %v1640_v52 = vcombine.low %v1615_v5, %v1623_v21  ;;  %v1641_v2 = vcombine.high %v1615_v5, %v1623_v21 }
 0x499   : > { %v1632_v60 = vrot.slane %v1624_v16, %v4937_v31  ;;  %v1639_v40 = vrot.slane %v1625_v62, %v4937_v31 }
 0x49a   : > { %v1648_v8 = vrot.slane %v1640_v52, %v4937_v31  ;;  %v1655_v42 = vrot.slane %v1641_v2, %v4937_v31 }
 0x4b5   : > { %v1976_v49 = vpop.xlane.xlu1 %1975 }
 0x4b6   : > { %v1984_v50 = vsub.f32 %v5090_v25, %v1976_v49 }
 0x4b8   : > { %v1999_v13 = vmul.f32 1.442695, %v1984_v50 }
 0x4b9   : > { %v903_v25 = vpop.permute.xlu1 %902 }
 0x4ba   : > { %4164 = vpow2.f32 %v1999_v13  ;;  %v1252_v35 = vcombine.low %v5097_v29, %v903_v25  ;;  %v1253_v36 = vcombine.high %v5097_v29, %v903_v25 }
 0x4bc   : > { %2017 = vadd.xlane.f32.xlu1 %v2016_v14  ;;  %v1260_v47 = vrot.slane %v1252_v35, %v4934_v23  ;;  %v1267_v53 = vrot.slane %v1253_v36, %v4934_v23 }
 0x4c4   : > { %v5146_v51 = vpop.eup %4164 }
 0x4c5   : > { %v2022_v15 = vsel %vm1952_vm3, %v5146_v51, 0.0 }
 0x4c6   : > { %2023 = vadd.xlane.f32.xlu0 %v2022_v15 }
 0x508   : > { %v2003_v38 = vpop.xlane.xlu0 %2002 }
 0x509   : > { %4166 = vrcp.f32 %v2003_v38 }
 0x50a   : > { %v2006_v63 = vpop.xlane.xlu1 %2005 }
 0x50b   : > { %4168 = vrcp.f32 %v2006_v63 }
 0x510   : > { %v2009_v54 = vpop.xlane.xlu0 %2008 }
 0x513   : > { %v4167_v28 = vpop.eup %4166 }
 0x514   : > { %v2012_v33 = vpop.xlane.xlu1 %2011  ;;  %v2033_v5 = vmul.f32 %v4167_v28, %v5114_v37 }
 0x515   : > { %4170 = vrcp.f32 %v2012_v33  ;;  %v4169_v63 = vpop.eup %4168 }
 0x516   : > { %4172 = vrcp.f32 %v2009_v54 }
 0x518   : > { %v909_v43 = vpop.permute.xlu1 %908  ;;  %v2015_v37 = vpop.xlane.xlu0 %2014 }
 0x519   : > { %v1268_v44 = vcombine.low %v897_v10, %v909_v43  ;;  %v1269_v46 = vcombine.high %v897_v10, %v909_v43  ;;  %v1656_v43 = vcombine.low %v1632_v60, %v1648_v8  ;;  %4174 = vrcp.f32 %v2015_v37 }
 0x51b   : > { %v1276_v56 = vrot.slane %v1268_v44, %v4934_v23  ;;  %v1283_v29 = vrot.slane %v1269_v46, %v4934_v23  ;;  %v1657_v46 = vcombine.high %v1632_v60, %v1648_v8 }
 0x51d   : > { %v1284_v9 = vcombine.low %v1260_v47, %v1276_v56  ;;  %v1285_v10 = vcombine.high %v1260_v47, %v1276_v56  ;;  %v1300_v12 = vcombine.low %v1267_v53, %v1283_v29  ;;  %v1301_v49 = vcombine.high %v1267_v53, %v1283_v29 }
 0x51e   : > { %v2034_v47 = vmul.f32 %v4169_v63, %v5118_v41 }
 0x51f   : > { %v1292_v50 = vrot.slane %v1284_v9, %v4937_v31  ;;  %v1299_v13 = vrot.slane %v1285_v10, %v4937_v31  ;;  %v1308_v14 = vrot.slane %v1300_v12, %v4937_v31  ;;  %v1315_v15 = vrot.slane %v1301_v49, %v4937_v31  ;;  %v4171_v33 = vpop.eup %4170 }
 0x520   : > { %v4173_v39 = vpop.eup %4172  ;;  %v2036_v53 = vmul.f32 %v4171_v33, %v5126_v48  ;;  %v1658_v9 = vcombine.low %v1639_v40, %v1655_v42  ;;  %v1659_v10 = vcombine.high %v1639_v40, %v1655_v42  ;;  %v2041_v12 = vpack.c.bf16 %v2034_v47, %v2033_v5 }
 0x521   : > { %v1660_v6 = vcombine.low %v1292_v50, %v1299_v13  ;;  %v3623_v7 = vcombine.high %v1292_v50, %v1299_v13  ;;  %v1676_v18 = vcombine.low %v1308_v14, %v1315_v15  ;;  %v3624_v19 = vcombine.high %v1308_v14, %v1315_v15  ;;  %v2021_v50 = vpop.xlane.xlu0 %2020 }
 0x522   : > { %v2035_v21 = vmul.f32 %v4173_v39, %v5122_v45 }
 0x523   : > { %v1667_v20 = vrot.slane %v1660_v6, %v4934_v23  ;;  %v1675_v22 = vrot.slane %v3623_v7, %v4934_v23  ;;  %v1683_v24 = vrot.slane %v1676_v18, %v4934_v23  ;;  %v1691_v25 = vrot.slane %v3624_v19, %v4934_v23  ;;  %v4175_v13 = vpop.eup %4174 }
 0x524   : > { %v2042_v49 = vpack.c.bf16 %v2036_v53, %v2035_v21  ;;  %v2037_v16 = vmul.f32 %v4175_v13, %v5130_v55  ;;  %v4058_v55 = vld [vmem:[#allocation10] sm:$0xff]  }
 0x525   : > { %v1692_v1 = vcombine.low %v1667_v20, %v1675_v22  ;;  %v1708_v3 = vcombine.low %v1683_v24, %v1691_v25  ;;  %v1693_v30 = vcombine.high %v1667_v20, %v1675_v22  ;;  %v1709_v32 = vcombine.high %v1683_v24, %v1691_v25  ;;  %v4060_v24 = vld [vmem:[#allocation10 + $0x10] sm:$0xff]   ;;  %v4061_v25 = vld [vmem:[#allocation10 + $0x18] sm:$0xff]  }
 0x527   : > { %v1700_v34 = vrot.slane %v1692_v1, %v4937_v31  ;;  %v1716_v35 = vrot.slane %v1708_v3, %v4937_v31  ;;  %v1707_v36 = vrot.slane %v1693_v30, %v4937_v31  ;;  %v1723_v38 = vrot.slane %v1709_v32, %v4937_v31 }
 0x529   : > { %v1724_v44 = vcombine.low %v1700_v34, %v1716_v35  ;;  %v1725_v57 = vcombine.high %v1700_v34, %v1716_v35  ;;  %v1726_v29 = vcombine.low %v1707_v36, %v1723_v38  ;;  %v1727_v11 = vcombine.high %v1707_v36, %v1723_v38 }
 0x52b   : > { %v2045_v54 = vpack.c.bf16 %v1724_v44, %v1656_v43  ;;  %v2046_v56 = vpack.c.bf16 %v1725_v57, %v1657_v46  ;;  %v2047_v41 = vpack.c.bf16 %v1726_v29, %v1658_v9  ;;  %v2048_v48 = vpack.c.bf16 %v1727_v11, %v1659_v10 }
 0x52d   : > { %3843 = vmatpush3.bf16.msra.mxu0 %v2045_v54  ;;  %3849 = vmatpush3.bf16.msra.mxu1 %v2046_v56 }
 0x52e   : > { %3854 = vmatprep.subr.bf16.mxu0 %v4497_v0  ;;  %3860 = vmatprep.subr.bf16.mxu1 %v4497_v0 }
 0x530   : > { %3845 = vmatmul.mubr.msk.bf16.vlgmr.msra.gmra.mrb[4].mxu0 %vm1952_vm3, %v2041_v12  ;;  %3851 = vmatmul.mubr.msk.bf16.vlgmr.msra.gmra.mrb[20].mxu1 %vm1952_vm3, %v2042_v49 }
 0x531   : > { %3855 = vmatpush3.bf16.msra.mxu0 %v2047_v41  ;;  %3861 = vmatpush3.bf16.msra.mxu1 %v2048_v48 }
 0x532   : > { %3856 = vmatprep.mubr.msk.bf16.mxu0 %vm4499_vm0, %v4497_v0  ;;  %3862 = vmatprep.mubr.msk.bf16.mxu1 %vm4499_vm0, %v4497_v0 }
 0x533   : > { %3866 = vmatprep.subr.bf16.mxu0 %v4497_v0 }
 0x549   : > { %v2018_v45 = vpop.xlane.xlu1 %2017 }
 0x54a   : > { %4176 = vrcp.f32 %v2018_v45 }
 0x54b   : > { %4178 = vrcp.f32 %v2021_v50 }
 0x553   : > { %v2024_v14 = vpop.xlane.xlu0 %2023 }
 0x554   : > { %v4177_v15 = vpop.eup %4176  ;;  %4180 = vrcp.f32 %v2024_v14 }
 0x555   : > { %v2038_v52 = vmul.f32 %v4177_v15, %v5142_v17  ;;  %v4179_v7 = vpop.eup %4178  ;;  %v4059_v17 = vld [vmem:[#allocation10 + $0x8] sm:$0xff]  }
 0x556   : > { %v2039_v19 = vmul.f32 %v4179_v7, %v5134_v4  ;;  %v4062_v4 = vld [vmem:[#allocation10 + $0x20] sm:$0xff]  }
 0x557   : > { %v2043_v6 = vpack.c.bf16 %v2038_v52, %v2037_v16 }
 0x559   : > { %3857 = vmatmul.mubr.msk.bf16.vlgmr.msra.gmra.mrb[8].mxu0 %vm1952_vm3, %v2043_v6 }
 0x55a   : > { %3882 = vmatprep.mubr.msk.bf16.mxu0 %vm4499_vm0, %v4497_v0  ;;  %3867 = vmatpush3.bf16.msra.mxu0 %v4058_v55 }
 0x55b   : > { %3868 = vmatprep.subr.bf16.mxu0 %v4497_v0 }
 0x55e   : > { %v4181_v18 = vpop.eup %4180  ;;  %3869 = vmatpush3.bf16.msra.mxu0 %v4059_v17 }
 0x55f   : > { %v2040_v20 = vmul.f32 %v4181_v18, %v5146_v51  ;;  %3870 = vmatprep.subr.bf16.mxu0 %v4497_v0  ;;  %v4063_v51 = vld [vmem:[#allocation10 + $0x28] sm:$0xff]  }
 0x561   : > { %v2044_v22 = vpack.c.bf16 %v2040_v20, %v2039_v19 }
 0x562   : > { %3871 = vmatpush3.bf16.msra.mxu0 %v4060_v24 }
 0x563   : > { %3863 = vmatmul.mubr.msk.bf16.vlgmr.msra.gmra.mrb[24].mxu1 %vm1952_vm3, %v2044_v22  ;;  %3872 = vmatprep.subr.bf16.mxu0 %v4497_v0 }
 0x564   : > { %2935 = vmatprep.mubr.bf16.mxu1 %v4498_v26 }
 0x566   : > { %3873 = vmatpush3.bf16.msra.mxu0 %v4061_v25 }
 0x567   : > { %3874 = vmatprep.subr.bf16.mxu0 %v4497_v0 }
 0x56a   : > { %3875 = vmatpush3.bf16.msra.mxu0 %v4062_v4 }
 0x56b   : > { %3876 = vmatprep.subr.bf16.mxu0 %v4497_v0 }
 0x56e   : > { %3877 = vmatpush3.bf16.msra.mxu0 %v4063_v51 }
 0x56f   : > { %3878 = vmatprep.subr.bf16.mxu0 %v4497_v0 }
 0x603   : > { %v2086_v28 = vpop.f32.mrb[4].mxu0  ;;  %v2130_v60 = vpop.f32.mrb[20].mxu1 }
 0x604   : > { %v3846_v8 = vpop.f32.mrb[5].mxu0  ;;  %v3852_v62 = vpop.f32.mrb[21].mxu1 }
 0x605   : > { %v2089_v2 = vpop.f32.mrb[6].mxu0  ;;  %v2133_v63 = vpop.f32.mrb[22].mxu1 }
 0x606   : > { %v3847_v1 = vpop.f32.mrb[7].mxu0  ;;  %v3853_v3 = vpop.f32.mrb[23].mxu1 }
 0x62c   : > { %v2174_v30 = vpop.f32.mrb[8].mxu0 }
 0x62d   : > { %v2225_v32 = vcombine.low %v2086_v28, %v2174_v30  ;;  %v2226_v33 = vcombine.high %v2086_v28, %v2174_v30  ;;  %v3858_v34 = vpop.f32.mrb[9].mxu0  ;;  %v4064_v30 = vld [vmem:[#allocation10 + $0x30] sm:$0xff]  }
 0x62e   : > { %v2177_v35 = vpop.f32.mrb[10].mxu0  ;;  %3879 = vmatpush3.bf16.msra.mxu0 %v4064_v30  ;;  %v4069_v30 = vld [vmem:[#allocation11 + $0x8] ss:$16 sps:$4 sm:$0xff]  }
 0x62f   : > { %v2293_v36 = vcombine.low %v2089_v2, %v2177_v35  ;;  %v2294_v38 = vcombine.high %v2089_v2, %v2177_v35  ;;  %v3859_v39 = vpop.f32.mrb[11].mxu0  ;;  %v2233_v46 = vrot.slane %v2225_v32, %v4934_v23  ;;  %v2240_v57 = vrot.slane %v2226_v33, %v4934_v23  ;;  %3880 = vmatprep.subr.bf16.mxu0 %v4497_v0 }
 0x631   : > { %v2301_v12 = vrot.slane %v2293_v36, %v4934_v23  ;;  %v2308_v49 = vrot.slane %v2294_v38, %v4934_v23 }
 0x636   : > { %v2218_v40 = vpop.f32.mrb[24].mxu1 }
 0x637   : > { %v2241_v42 = vcombine.low %v2130_v60, %v2218_v40  ;;  %v2242_v43 = vcombine.high %v2130_v60, %v2218_v40  ;;  %v3864_v44 = vpop.f32.mrb[25].mxu1 }
 0x638   : > { %v2221_v47 = vpop.f32.mrb[26].mxu1 }
 0x639   : > { %v2249_v53 = vrot.slane %v2241_v42, %v4934_v23  ;;  %v2256_v54 = vrot.slane %v2242_v43, %v4934_v23  ;;  %v2309_v56 = vcombine.low %v2133_v63, %v2221_v47  ;;  %v2310_v29 = vcombine.high %v2133_v63, %v2221_v47  ;;  %v3865_v11 = vpop.f32.mrb[27].mxu1 }
 0x63b   : > { %v2257_v5 = vcombine.low %v2233_v46, %v2249_v53  ;;  %v2258_v21 = vcombine.high %v2233_v46, %v2249_v53  ;;  %v2273_v9 = vcombine.low %v2240_v57, %v2256_v54  ;;  %v2274_v10 = vcombine.high %v2240_v57, %v2256_v54 }
 0x63c   : > { %v2317_v41 = vrot.slane %v2309_v56, %v4934_v23  ;;  %v2324_v48 = vrot.slane %v2310_v29, %v4934_v23 }
 0x63d   : > { %v2265_v37 = vrot.slane %v2257_v5, %v4937_v31  ;;  %v2272_v45 = vrot.slane %v2258_v21, %v4937_v31  ;;  %v2281_v50 = vrot.slane %v2273_v9, %v4937_v31  ;;  %v2288_v13 = vrot.slane %v2274_v10, %v4937_v31  ;;  %v4065_v5 = vld [vmem:[#allocation10 + $0x38] sm:$0xff]  }
 0x63e   : > { %v2325_v14 = vcombine.low %v2301_v12, %v2317_v41  ;;  %v2326_v15 = vcombine.high %v2301_v12, %v2317_v41  ;;  %v2341_v16 = vcombine.low %v2308_v49, %v2324_v48  ;;  %v2342_v52 = vcombine.high %v2308_v49, %v2324_v48  ;;  %3881 = vmatpush3.bf16.msra.mxu0 %v4065_v5  ;;  %v4099_v5 = vld [vmem:[#allocation11 + $0xa8] ss:$16 sps:$4 sm:$0xff]  }
 0x63f   : > { %v2361_v6 = vcombine.low %v2265_v37, %v2272_v45  ;;  %v3633_v7 = vcombine.high %v2265_v37, %v2272_v45  ;;  %v2377_v18 = vcombine.low %v2281_v50, %v2288_v13  ;;  %v3634_v19 = vcombine.high %v2281_v50, %v2288_v13 }
 0x640   : > { %v2333_v20 = vrot.slane %v2325_v14, %v4937_v31  ;;  %v2340_v22 = vrot.slane %v2326_v15, %v4937_v31  ;;  %v2349_v55 = vrot.slane %v2341_v16, %v4937_v31  ;;  %v2356_v17 = vrot.slane %v2342_v52, %v4937_v31 }
 0x641   : > { %v2368_v24 = vrot.slane %v2361_v6, %v4934_v23  ;;  %v2376_v25 = vrot.slane %v3633_v7, %v4934_v23  ;;  %v2384_v4 = vrot.slane %v2377_v18, %v4934_v23  ;;  %v2392_v51 = vrot.slane %v3634_v19, %v4934_v23 }
 0x642   : > { %v2429_v28 = vcombine.low %v2333_v20, %v2340_v22  ;;  %v3635_v60 = vcombine.high %v2333_v20, %v2340_v22  ;;  %v2445_v8 = vcombine.low %v2349_v55, %v2356_v17  ;;  %v3636_v62 = vcombine.high %v2349_v55, %v2356_v17  ;;  %v3637_v55 = vld [vmem:[%s5405_s6] ss:$0 sm:$0xff] }
 0x643   : > { %v2394_v2 = vcombine.high %v2368_v24, %v2376_v25  ;;  %v2410_v63 = vcombine.high %v2384_v4, %v2392_v51  ;;  %v2393_v1 = vcombine.low %v2368_v24, %v2376_v25  ;;  %v2409_v3 = vcombine.low %v2384_v4, %v2392_v51  ;;  %v4202_v51 = vld [vmem:[%s4840_s30] sm:$0xff] }
 0x644   : > { %v2436_v32 = vrot.slane %v2429_v28, %v4934_v23  ;;  %v2444_v33 = vrot.slane %v3635_v60, %v4934_v23  ;;  %v2452_v34 = vrot.slane %v2445_v8, %v4934_v23  ;;  %v2460_v35 = vrot.slane %v3636_v62, %v4934_v23  ;;  %v4203_v62 = vld [vmem:[%s4840_s30 + $0x8] sm:$0xff]  ;;  %s5443_s30 = sld [smem:[#allocation23_spill]] }
 0x645   : > { %v2408_v36 = vrot.slane %v2394_v2, %v4937_v31  ;;  %v2424_v38 = vrot.slane %v2410_v63, %v4937_v31  ;;  %v2401_v39 = vrot.slane %v2393_v1, %v4937_v31  ;;  %v2417_v40 = vrot.slane %v2409_v3, %v4937_v31  ;;  %v4066_v1 = vld [vmem:[#allocation11] ss:$16 sps:$4 sm:$0xff]   ;;  %v4068_v3 = vld [vmem:[#allocation11 + $0x4] ss:$16 sps:$4 sm:$0xff]  }
 0x646   : > { %v2462_v42 = vcombine.high %v2436_v32, %v2444_v33  ;;  %v2478_v43 = vcombine.high %v2452_v34, %v2460_v35  ;;  %v2461_v44 = vcombine.low %v2436_v32, %v2444_v33  ;;  %v2477_v46 = vcombine.low %v2452_v34, %v2460_v35  ;;  %v4071_v32 = vld [vmem:[#allocation11 + $0xc] ss:$16 sps:$4 sm:$0xff]   ;;  %2903 = vmatprep.subr.bf16.mxu1 %v4068_v3  ;;  %v4072_v33 = vld [vmem:[#allocation11 + $0x20] ss:$16 sps:$4 sm:$0xff]   ;;  %v4074_v34 = vld [vmem:[#allocation11 + $0x24] ss:$16 sps:$4 sm:$0xff]  }
 0x647   : > { %v2427_v57 = vcombine.low %v2408_v36, %v2424_v38  ;;  %v2425_v47 = vcombine.low %v2401_v39, %v2417_v40  ;;  %v2426_v53 = vcombine.high %v2401_v39, %v2417_v40  ;;  %v2428_v54 = vcombine.high %v2408_v36, %v2424_v38  ;;  %2946 = vmatprep.subr.bf16.mxu0 %v4071_v32  ;;  %v4075_v35 = vld [vmem:[#allocation11 + $0x28] ss:$16 sps:$4 sm:$0xff]   ;;  %v4077_v36 = vld [vmem:[#allocation11 + $0x2c] ss:$16 sps:$4 sm:$0xff]   ;;  %v4078_v38 = vld [vmem:[#allocation11 + $0x40] ss:$16 sps:$4 sm:$0xff]  }
 0x648   : > { %v2476_v23 = vrot.slane %v2462_v42, %v4937_v31  ;;  %v2492_v56 = vrot.slane %v2478_v43, %v4937_v31  ;;  %v2469_v29 = vrot.slane %v2461_v44, %v4937_v31  ;;  %v2485_v11 = vrot.slane %v2477_v46, %v4937_v31  ;;  %2904 = vmatpush1.bf16.msra.mxu1 %v4066_v1  ;;  %v4080_v39 = vld [vmem:[#allocation11 + $0x44] ss:$16 sps:$4 sm:$0xff]   ;;  %v4081_v40 = vld [vmem:[#allocation11 + $0x48] ss:$16 sps:$4 sm:$0xff]   ;;  %v4083_v42 = vld [vmem:[#allocation11 + $0x4c] ss:$16 sps:$4 sm:$0xff]  }
 0x649   : > { %2905 = vmatprep.subr.bf16.mxu1 %v4074_v34  ;;  %v4086_v43 = vld [vmem:[#allocation11 + $0x64] ss:$16 sps:$4 sm:$0xff]   ;;  %v4089_v44 = vld [vmem:[#allocation11 + $0x6c] ss:$16 sps:$4 sm:$0xff]   ;;  %v4084_v46 = vld [vmem:[#allocation11 + $0x60] ss:$16 sps:$4 sm:$0xff]  }
 0x64a   : > { %v2495_v21 = vcombine.low %v2476_v23, %v2492_v56  ;;  %v2494_v9 = vcombine.high %v2469_v29, %v2485_v11  ;;  %v2493_v10 = vcombine.low %v2469_v29, %v2485_v11  ;;  %v2496_v12 = vcombine.high %v2476_v23, %v2492_v56  ;;  %v4093_v23 = vld [vmem:[#allocation11 + $0x88] ss:$16 sps:$4 sm:$0xff]   ;;  %v4098_v56 = vld [vmem:[#allocation11 + $0xa4] ss:$16 sps:$4 sm:$0xff]   ;;  %v4101_v29 = vld [vmem:[#allocation11 + $0xac] ss:$16 sps:$4 sm:$0xff]  }
 0x64b   : > { %v4096_v11 = vld [vmem:[#allocation11 + $0xa0] ss:$16 sps:$4 sm:$0xff]   ;;  %v4118_v34 = vld [vmem:[#allocation13 + $0x48] sm:$0xff]  }
 0x64c   : > { %v4016_v49 = vpack.i.bf16 %v2495_v21, %v2427_v57  ;;  %v4011_v0 = vpack.i.bf16 %v2494_v9, %v2426_v53  ;;  %v4021_v41 = vpack.i.bf16 %v2496_v12, %v2428_v54  ;;  %2906 = vmatpush1.bf16.msra.mxu1 %v4072_v33  ;;  %v4087_v57 = vld [vmem:[#allocation11 + $0x68] ss:$16 sps:$4 sm:$0xff]   ;;  %v4095_v53 = vld [vmem:[#allocation11 + $0x8c] ss:$16 sps:$4 sm:$0xff]   ;;  %v4090_v54 = vld [vmem:[#allocation11 + $0x80] ss:$16 sps:$4 sm:$0xff]  }
 0x64d   : > { %2907 = vmatprep.subr.bf16.mxu1 %v4080_v39  ;;  %v4104_v21 = vld [vmem:[#allocation11 + $0xc4] ss:$16 sps:$4 sm:$0xff]   ;;  %v4107_v9 = vld [vmem:[#allocation11 + $0xcc] ss:$16 sps:$4 sm:$0xff]   ;;  %v4105_v12 = vld [vmem:[#allocation11 + $0xc8] ss:$16 sps:$4 sm:$0xff]  }
 0x64e   : > { %4017 = vrot.lane.b32.xlu1 %v4016_v49, %s4501_s21  ;;  %4012 = vrot.lane.b32.xlu0 %v4011_v0, %s4502_s22  ;;  %v4110_v49 = vld [vmem:[#allocation11 + $0xe4] ss:$16 sps:$4 sm:$0xff]   ;;  %v4113_v0 = vld [vmem:[#allocation11 + $0xec] ss:$16 sps:$4 sm:$0xff]  }
 0x64f   : > { %v4114_v3 = vld [vmem:[#allocation13 + $0x40] sm:$0xff]   ;;  %v4122_v39 = vld [vmem:[#allocation13 + $0x50] sm:$0xff]  }
 0x650   : > { %2908 = vmatpush1.bf16.msra.mxu1 %v4078_v38  ;;  %v4116_v32 = vld [vmem:[#allocation13] sm:$0xff]   ;;  %v4121_v38 = vld [vmem:[#allocation13 + $0x88] sm:$0xff]  }
 0x651   : > { %2909 = vmatprep.subr.bf16.mxu1 %v4086_v43  ;;  %v4117_v33 = vld [vmem:[#allocation13 + $0x80] sm:$0xff]   ;;  %v4125_v43 = vld [vmem:[#allocation13 + $0x90] sm:$0xff]  }
 0x652   : > { %4022 = vrot.lane.b32.xlu1 %v4021_v41, %s4500_s29  ;;  %v4108_v41 = vld [vmem:[#allocation11 + $0xe0] ss:$16 sps:$4 sm:$0xff]   ;;  %s5444_s29 = sld [smem:[#allocation24_spill]] }
 0x654   : > { %2910 = vmatpush1.bf16.msra.mxu1 %v4084_v46  ;;  %v4127_v46 = vld [vmem:[#allocation13 + $0xd8] sm:$0xff]  }
 0x6c0   : > { %v4018_v48 = vpop.permute.xlu1 %4017  ;;  %v4013_v37 = vpop.permute.xlu0 %4012 }
 0x6c1   : > { %v4015_v45 = vunpack.i.h.bf16 %v4013_v37  ;;  %v4014_v50 = vunpack.i.l.bf16 %v4013_v37  ;;  %v4020_v31 = vunpack.i.h.bf16 %v4018_v48  ;;  %v4019_v13 = vunpack.i.l.bf16 %v4018_v48  ;;  %v4111_v48 = vld [vmem:[#allocation11 + $0xe8] ss:$16 sps:$4 sm:$0xff]  }
 0x6c3   : > { %v2521_v14 = vsel %vm1736_vm1, %v2425_v47, %v4014_v50  ;;  %v2522_v15 = vsel %vm1736_vm1, %v2493_v10, %v4015_v45  ;;  %v4092_v47 = vld [vmem:[#allocation11 + $0x84] ss:$16 sps:$4 sm:$0xff]   ;;  %v4102_v10 = vld [vmem:[#allocation11 + $0xc0] ss:$16 sps:$4 sm:$0xff]  }
 0x6c4   : > { %v4023_v16 = vpop.permute.xlu1 %4022  ;;  %v2524_v7 = vsel %vm2523_vm5, %v2521_v14, %v4019_v13  ;;  %v2525_v18 = vsel %vm2523_vm5, %v2522_v15, %v4020_v31  ;;  %2911 = vmatprep.subr.bf16.mxu1 %v4092_v47  ;;  %v4129_v47 = vld [vmem:[#allocation13 + $0x98] sm:$0xff]  }
 0x6c5   : > { %v4025_v52 = vunpack.i.h.bf16 %v4023_v16  ;;  %v4024_v6 = vunpack.i.l.bf16 %v4023_v16  ;;  %2912 = vmatpush1.bf16.msra.mxu1 %v4090_v54  ;;  %v4131_v54 = vld [vmem:[#allocation13 + $0xe0] sm:$0xff]  }
 0x6c6   : > { %2913 = vmatprep.subr.bf16.mxu1 %v4098_v56  ;;  %v4133_v56 = vld [vmem:[#allocation13 + $0xa0] sm:$0xff]  }
 0x6c7   : > { %v2527_v19 = vsel %vm2526_vm6, %v2524_v7, %v4024_v6  ;;  %v2528_v20 = vsel %vm2526_vm6, %v2525_v18, %v4025_v52 }
 0x6c8   : > { %v2529_v22 = vpack.c.bf16 %v2528_v20, %v2527_v19 }
 0x6c9   : > { %2914 = vmatpush1.bf16.msra.mxu1 %v4096_v11  ;;  %v4135_v11 = vld [vmem:[#allocation13 + $0xe8] sm:$0xff]  }
 0x6ca   : > { %3883 = vmatmul.mubr.bf16.vlgmr.msra.gmra.mrb[12].mxu0 %v2529_v22  ;;  %2915 = vmatprep.subr.bf16.mxu1 %v4104_v21  ;;  %v4137_v21 = vld [vmem:[#allocation13 + $0xa8] sm:$0xff]  }
 0x6cb   : > { %2978 = vmatprep.mubr.bf16.mxu0 %v4498_v26  ;;  %2947 = vmatpush1.bf16.msra.mxu0 %v4069_v30  ;;  %v4115_v30 = vld [vmem:[#allocation13 + $0xc0] sm:$0xff]  }
 0x6cc   : > { %2948 = vmatprep.subr.bf16.mxu0 %v4077_v36  ;;  %v4120_v36 = vld [vmem:[#allocation13 + $0x8] sm:$0xff]  }
 0x6cd   : > { %2916 = vmatpush1.bf16.msra.mxu1 %v4102_v10  ;;  %v4139_v10 = vld [vmem:[#allocation13 + $0xf0] sm:$0xff]  }
 0x6ce   : > { %2917 = vmatprep.subr.bf16.mxu1 %v4110_v49  ;;  %v4141_v49 = vld [vmem:[#allocation13 + $0xb0] sm:$0xff]  }
 0x6cf   : > { %2949 = vmatpush1.bf16.msra.mxu0 %v4075_v35  ;;  %v4119_v35 = vld [vmem:[#allocation13 + $0xc8] sm:$0xff]  }
 0x6d0   : > { %2950 = vmatprep.subr.bf16.mxu0 %v4083_v42  ;;  %v4124_v42 = vld [vmem:[#allocation13 + $0x10] sm:$0xff]  }
 0x6d1   : > { %2918 = vmatpush1.bf16.msra.mxu1 %v4108_v41  ;;  %v4143_v41 = vld [vmem:[#allocation13 + $0xf8] sm:$0xff]  }
 0x6d2   : > { %3754 = vmatprep.subr.bf16.mxu1 %v4114_v3 }
 0x6d3   : > { %2951 = vmatpush1.bf16.msra.mxu0 %v4081_v40  ;;  %v4123_v40 = vld [vmem:[#allocation13 + $0xd0] sm:$0xff]  }
 0x6d4   : > { %2952 = vmatprep.subr.bf16.mxu0 %v4089_v44  ;;  %v4126_v44 = vld [vmem:[#allocation13 + $0x58] sm:$0xff]  }
 0x6d7   : > { %2953 = vmatpush1.bf16.msra.mxu0 %v4087_v57  ;;  %v4128_v57 = vld [vmem:[#allocation13 + $0x18] sm:$0xff]  }
 0x6d8   : > { %2954 = vmatprep.subr.bf16.mxu0 %v4095_v53  ;;  %v4130_v53 = vld [vmem:[#allocation13 + $0x60] sm:$0xff]  }
 0x6db   : > { %2955 = vmatpush1.bf16.msra.mxu0 %v4093_v23  ;;  %v4132_v23 = vld [vmem:[#allocation13 + $0x20] sm:$0xff]  }
 0x6dc   : > { %2956 = vmatprep.subr.bf16.mxu0 %v4101_v29  ;;  %v4134_v29 = vld [vmem:[#allocation13 + $0x68] sm:$0xff]  }
 0x6df   : > { %2957 = vmatpush1.bf16.msra.mxu0 %v4099_v5  ;;  %v4136_v5 = vld [vmem:[#allocation13 + $0x28] sm:$0xff]  }
 0x6e0   : > { %2958 = vmatprep.subr.bf16.mxu0 %v4107_v9  ;;  %v4138_v9 = vld [vmem:[#allocation13 + $0x70] sm:$0xff]  }
 0x6e3   : > { %2959 = vmatpush1.bf16.msra.mxu0 %v4105_v12  ;;  %v4140_v12 = vld [vmem:[#allocation13 + $0x30] sm:$0xff]  }
 0x6e4   : > { %2960 = vmatprep.subr.bf16.mxu0 %v4113_v0  ;;  %v4142_v0 = vld [vmem:[#allocation13 + $0x78] sm:$0xff]  }
 0x6e7   : > { %2961 = vmatpush1.bf16.msra.mxu0 %v4111_v48  ;;  %v4144_v48 = vld [vmem:[#allocation13 + $0x38] sm:$0xff]  }
 0x6e8   : > { %3776 = vmatprep.subr.bf16.mxu0 %v4115_v30 }
 0x79d   : > { %v2635_v17 = vpop.f32.mrb[12].mxu0 }
 0x79e   : > { %v2636_v24 = vadd.f32 %v3637_v55, %v2635_v17  ;;  %v3884_v25 = vpop.f32.mrb[13].mxu0 }
 0x79f   : > { %v2638_v4 = vpop.f32.mrb[14].mxu0 }
 0x7a0   : > { %v5257_v28 = vadd.f32 %v4202_v51, %v2636_v24  ;;  %v2639_v60 = vadd.f32 %v3637_v55, %v2638_v4  ;;  %v3885_v8 = vpop.f32.mrb[15].mxu0  ;;  %v3646_v24 = vld [vmem:[%s5442_s17] ss:$0 sm:$0xff] }
 0x7a1   : > { %v3647_v8 = vld [vmem:[%s5443_s30] ss:$0 sm:$0xff]  ;;  %s5354_s30 = scalar_lea.hbm %s5446_s13, %s3719_s20 }
 0x7a2   : > { %v5260_v2 = vadd.f32 %v4203_v62, %v2639_v60  ;;  %2646 = vadd.xlane.f32.xlu1 %v5257_v28  ;;  %v2652_v26 = vmul.f32 %v5257_v28, %v5257_v28 }
 0x7a4   : > { %2648 = vadd.xlane.f32.xlu0 %v5260_v2  ;;  %v2653_v63 = vmul.f32 %v5260_v2, %v5260_v2 }
 0x7a8   : > { %2654 = vadd.xlane.f32.xlu0 %v2652_v26 }
 0x7ac   : > { %2656 = vadd.xlane.f32.xlu0 %v2653_v63 }
 0x82f   : > { %v2647_v37 = vpop.xlane.xlu1 %2646 }
 0x830   : > { %v2650_v50 = vmul.f32 0.0078125, %v2647_v37  ;;  %v4145_v37 = vld [vmem:[#allocation13 + $0xb8] sm:$0xff]  }
 0x831   : > { %v2649_v45 = vpop.xlane.xlu0 %2648 }
 0x832   : > { %v2660_v13 = vmul.f32 %v2650_v50, %v2650_v50  ;;  %v2651_v14 = vmul.f32 0.0078125, %v2649_v45  ;;  %v2664_v22 = vsub.f32 %v5257_v28, %v2650_v50  ;;  %v2721_v45 = vld [vmem:[%s5444_s29] sm:$0xf]  ;;  %v2737_v50 = vsub.s32 3, %v4890_v58  ;;  %s4408_s29 = scalar_lea.vmem %s4407_s24, 512 }
 0x833   : > { %p4410_p3 = scmp.lt.s32.totalorder %s4408_s29, %s4402_s15 }
 0x834   : > { %v2661_v6 = vmul.f32 %v2651_v14, %v2651_v14  ;;  %v2665_v25 = vsub.f32 %v5260_v2, %v2651_v14  ;;  %v2730_v14 = vrot.slane %v2721_v45, %v631_v61 }
 0x835   : > { %v2655_v31 = vpop.xlane.xlu0 %2654  ;;  %p4411_p2 = por %p4410_p3, %p4409_p1 }
 0x836   : > { %v2658_v15 = vmul.f32 0.0078125, %v2655_v31  ;;  %v2726_v31 = vrot.slane %v2721_v45, %v627_v59 }
 0x837   : > { %p4412_p8 = pnand %p4411_p2, %p4405_p13 }
 0x838   : > { %v2662_v16 = vsub.f32 %v2658_v15, %v2660_v13  ;;  %v2734_v13 = vrot.slane %v2721_v45, %v635_v27  ;;  %v2738_v15 = vrot.slane %v2721_v45, %v2737_v50 }
 0x839   : > { %v2657_v52 = vpop.xlane.xlu0 %2656 }
 0x83a   : > { %v2666_v7 = vadd.f32 1e-05, %v2662_v16  ;;  %v2659_v18 = vmul.f32 0.0078125, %v2657_v52 }
 0x83c   : > { %4182 = vrsqrt.f32 %v2666_v7  ;;  %v2663_v19 = vsub.f32 %v2659_v18, %v2661_v6 }
 0x83e   : > { %v2667_v20 = vadd.f32 1e-05, %v2663_v19 }
 0x840   : > { %4184 = vrsqrt.f32 %v2667_v20 }
 0x846   : > { %v4183_v55 = vpop.eup %4182 }
 0x847   : > { %v2670_v17 = vmul.f32 %v4183_v55, %v2664_v22 }
 0x849   : > { %v2678_v60 = vmul.f32 %v3646_v24, %v2670_v17 }
 0x84a   : > { %v4185_v4 = vpop.eup %4184 }
 0x84b   : > { %v2671_v51 = vmul.f32 %v4185_v4, %v2665_v25  ;;  %v2686_v26 = vadd.f32 %v3647_v8, %v2678_v60 }
 0x84d   : > { %v2679_v62 = vmul.f32 %v3646_v24, %v2671_v51 }
 0x84f   : > { %v2687_v63 = vadd.f32 %v3647_v8, %v2679_v62 }
 0x851   : > { %v2688_v1 = vpack.c.bf16 %v2687_v63, %v2686_v26 }
 0x853   : > { %2936 = vmatmul.mubr.bf16.vlgmr.msra.gmra.mrb[28].mxu1 %v2688_v1  ;;  %2979 = vmatmul.mubr.bf16.vlgmr.msra.gmra.mrb[16].mxu0 %v2688_v1 }
 0x854   : > { %3755 = vmatpush3.bf16.msra.mxu1 %v4116_v32  ;;  %3777 = vmatpush3.bf16.msra.mxu0 %v4117_v33 }
 0x855   : > { %3756 = vmatprep.subr.bf16.mxu1 %v4118_v34  ;;  %3778 = vmatprep.subr.bf16.mxu0 %v4119_v35 }
 0x858   : > { %3757 = vmatpush3.bf16.msra.mxu1 %v4120_v36  ;;  %3779 = vmatpush3.bf16.msra.mxu0 %v4121_v38 }
 0x859   : > { %3758 = vmatprep.subr.bf16.mxu1 %v4122_v39  ;;  %3780 = vmatprep.subr.bf16.mxu0 %v4123_v40 }
 0x85c   : > { %3759 = vmatpush3.bf16.msra.mxu1 %v4124_v42  ;;  %3781 = vmatpush3.bf16.msra.mxu0 %v4125_v43 }
 0x85d   : > { %3760 = vmatprep.subr.bf16.mxu1 %v4126_v44  ;;  %3782 = vmatprep.subr.bf16.mxu0 %v4127_v46 }
 0x860   : > { %3761 = vmatpush3.bf16.msra.mxu1 %v4128_v57  ;;  %3783 = vmatpush3.bf16.msra.mxu0 %v4129_v47 }
 0x861   : > { %3762 = vmatprep.subr.bf16.mxu1 %v4130_v53  ;;  %3784 = vmatprep.subr.bf16.mxu0 %v4131_v54 }
 0x864   : > { %3763 = vmatpush3.bf16.msra.mxu1 %v4132_v23  ;;  %3785 = vmatpush3.bf16.msra.mxu0 %v4133_v56 }
 0x865   : > { %3764 = vmatprep.subr.bf16.mxu1 %v4134_v29  ;;  %3786 = vmatprep.subr.bf16.mxu0 %v4135_v11 }
 0x868   : > { %3765 = vmatpush3.bf16.msra.mxu1 %v4136_v5  ;;  %3787 = vmatpush3.bf16.msra.mxu0 %v4137_v21 }
 0x869   : > { %3766 = vmatprep.subr.bf16.mxu1 %v4138_v9  ;;  %3788 = vmatprep.subr.bf16.mxu0 %v4139_v10 }
 0x86c   : > { %3767 = vmatpush3.bf16.msra.mxu1 %v4140_v12  ;;  %3789 = vmatpush3.bf16.msra.mxu0 %v4141_v49 }
 0x86d   : > { %3768 = vmatprep.subr.bf16.mxu1 %v4142_v0  ;;  %3790 = vmatprep.subr.bf16.mxu0 %v4143_v41 }
 0x870   : > { %3769 = vmatpush3.bf16.msra.mxu1 %v4144_v48  ;;  %3791 = vmatpush3.bf16.msra.mxu0 %v4145_v37 }
 0x926   : > { %v2937_v16 = vpop.f32.mrb[28].mxu1  ;;  %v2980_v52 = vpop.f32.mrb[16].mxu0 }
 0x927   : > { %v5286_v6 = vadd.f32 %v2937_v16, %v2726_v31  ;;  %v5288_v7 = vadd.f32 %v2980_v52, %v2734_v13  ;;  %v2939_v18 = vpop.f32.mrb[29].mxu1  ;;  %v2982_v19 = vpop.f32.mrb[17].mxu0 }
 0x928   : > { %v5290_v20 = vadd.f32 %v2939_v18, %v2730_v14  ;;  %v5292_v22 = vadd.f32 %v2982_v19, %v2738_v15  ;;  %v2941_v59 = vpop.f32.mrb[30].mxu1  ;;  %v2984_v55 = vpop.f32.mrb[18].mxu0 }
 0x929   : > { %v2989_v27 = vmul.f32 %v5286_v6, %v5286_v6  ;;  %v2991_v58 = vmul.f32 %v5288_v7, %v5288_v7  ;;  %v5298_v61 = vadd.f32 %v2941_v59, %v2726_v31  ;;  %v5300_v17 = vadd.f32 %v2984_v55, %v2734_v13  ;;  %v2943_v24 = vpop.f32.mrb[31].mxu1  ;;  %v2986_v25 = vpop.f32.mrb[19].mxu0 }
 0x92a   : > { %v2990_v4 = vmul.f32 %v5290_v20, %v5290_v20  ;;  %v2992_v51 = vmul.f32 %v5292_v22, %v5292_v22  ;;  %v5306_v60 = vadd.f32 %v2943_v24, %v2730_v14  ;;  %v5308_v8 = vadd.f32 %v2986_v25, %v2738_v15 }
 0x92b   : > { %v2997_v62 = vmul.f32 %v2989_v27, %v5286_v6  ;;  %v2999_v26 = vmul.f32 %v2991_v58, %v5288_v7  ;;  %v2993_v63 = vmul.f32 %v5298_v61, %v5298_v61  ;;  %v2995_v1 = vmul.f32 %v5300_v17, %v5300_v17 }
 0x92c   : > { %v2998_v3 = vmul.f32 %v2990_v4, %v5290_v20  ;;  %v3000_v30 = vmul.f32 %v2992_v51, %v5292_v22  ;;  %v2994_v32 = vmul.f32 %v5306_v60, %v5306_v60  ;;  %v2996_v33 = vmul.f32 %v5308_v8, %v5308_v8 }
 0x92d   : > { %v3005_v34 = vmul.f32 0.044715, %v2997_v62  ;;  %v3007_v35 = vmul.f32 0.044715, %v2999_v26  ;;  %v3001_v36 = vmul.f32 %v2993_v63, %v5298_v61  ;;  %v3003_v38 = vmul.f32 %v2995_v1, %v5300_v17 }
 0x92e   : > { %v3006_v39 = vmul.f32 0.044715, %v2998_v3  ;;  %v3008_v40 = vmul.f32 0.044715, %v3000_v30  ;;  %v3002_v42 = vmul.f32 %v2994_v32, %v5306_v60  ;;  %v3004_v43 = vmul.f32 %v2996_v33, %v5308_v8 }
 0x92f   : > { %v3013_v44 = vadd.f32 %v3005_v34, %v5286_v6  ;;  %v3015_v46 = vadd.f32 %v3007_v35, %v5288_v7  ;;  %v3009_v57 = vmul.f32 0.044715, %v3001_v36  ;;  %v3011_v47 = vmul.f32 0.044715, %v3003_v38 }
 0x930   : > { %v3014_v53 = vadd.f32 %v3006_v39, %v5290_v20  ;;  %v3016_v54 = vadd.f32 %v3008_v40, %v5292_v22  ;;  %v3010_v23 = vmul.f32 0.044715, %v3002_v42  ;;  %v3012_v56 = vmul.f32 0.044715, %v3004_v43 }
 0x931   : > { %v3021_v29 = vmul.f32 0.7978846, %v3013_v44  ;;  %v3023_v11 = vmul.f32 0.7978846, %v3015_v46  ;;  %v3017_v5 = vadd.f32 %v3009_v57, %v5298_v61  ;;  %v3019_v21 = vadd.f32 %v3011_v47, %v5300_v17 }
 0x932   : > { %v3022_v9 = vmul.f32 0.7978846, %v3014_v53  ;;  %v3024_v10 = vmul.f32 0.7978846, %v3016_v54  ;;  %v3018_v12 = vadd.f32 %v3010_v23, %v5306_v60  ;;  %v3020_v49 = vadd.f32 %v3012_v56, %v5308_v8 }
 0x933   : > { %4186 = vtanh.f32 %v3021_v29  ;;  %v3025_v0 = vmul.f32 0.7978846, %v3017_v5  ;;  %v3027_v41 = vmul.f32 0.7978846, %v3019_v21 }
 0x934   : > { %4188 = vtanh.f32 %v3023_v11  ;;  %v3026_v48 = vmul.f32 0.7978846, %v3018_v12  ;;  %v3028_v37 = vmul.f32 0.7978846, %v3020_v49 }
 0x935   : > { %4190 = vtanh.f32 %v3022_v9 }
 0x936   : > { %4192 = vtanh.f32 %v3024_v10 }
 0x937   : > { %4194 = vtanh.f32 %v3025_v0 }
 0x938   : > { %4196 = vtanh.f32 %v3027_v41 }
 0x939   : > { %4198 = vtanh.f32 %v3026_v48 }
 0x93a   : > { %4200 = vtanh.f32 %v3028_v37 }
 0x93d   : > { %v4187_v45 = vpop.eup %4186 }
 0x93e   : > { %v4189_v50 = vpop.eup %4188  ;;  %v3037_v31 = vadd.f32 1.0, %v4187_v45 }
 0x93f   : > { %v4191_v13 = vpop.eup %4190  ;;  %v3039_v14 = vadd.f32 1.0, %v4189_v50 }
 0x940   : > { %v4193_v15 = vpop.eup %4192  ;;  %v3038_v16 = vadd.f32 1.0, %v4191_v13  ;;  %v3045_v59 = vmul.f32 0.5, %v3037_v31 }
 0x941   : > { %v4195_v52 = vpop.eup %4194  ;;  %v3040_v18 = vadd.f32 1.0, %v4193_v15  ;;  %v3047_v58 = vmul.f32 0.5, %v3039_v14 }
 0x942   : > { %v4197_v19 = vpop.eup %4196  ;;  %v3041_v55 = vadd.f32 1.0, %v4195_v52  ;;  %v3046_v62 = vmul.f32 0.5, %v3038_v16  ;;  %v3053_v3 = vmul.f32 %v3045_v59, %v5286_v6 }
 0x943   : > { %v4199_v27 = vpop.eup %4198  ;;  %v3043_v24 = vadd.f32 1.0, %v4197_v19  ;;  %v3048_v1 = vmul.f32 0.5, %v3040_v18  ;;  %v3055_v33 = vmul.f32 %v3047_v58, %v5288_v7 }
 0x944   : > { %v4201_v25 = vpop.eup %4200  ;;  %v3049_v4 = vmul.f32 0.5, %v3041_v55  ;;  %v3042_v51 = vadd.f32 1.0, %v4199_v27  ;;  %v3054_v36 = vmul.f32 %v3046_v62, %v5290_v20  ;;  %v3680_v20 = vld [vmem:[%s5445_s16] ss:$0 sm:$0xff] }
 0x945   : > { %v3051_v26 = vmul.f32 0.5, %v3043_v24  ;;  %v3044_v63 = vadd.f32 1.0, %v4201_v25  ;;  %v3056_v40 = vmul.f32 %v3048_v1, %v5292_v22 }
 0x946   : > { %v3057_v30 = vmul.f32 %v3049_v4, %v5298_v61  ;;  %v3050_v32 = vmul.f32 0.5, %v3042_v51 }
 0x947   : > { %v3059_v34 = vmul.f32 %v3051_v26, %v5300_v17  ;;  %v3052_v35 = vmul.f32 0.5, %v3044_v63 }
 0x948   : > { %v3058_v38 = vmul.f32 %v3050_v32, %v5306_v60  ;;  %v3061_v39 = vpack.c.bf16 %v3057_v30, %v3053_v3 }
 0x949   : > { %v3060_v42 = vmul.f32 %v3052_v35, %v5308_v8  ;;  %v3063_v43 = vpack.c.bf16 %v3059_v34, %v3055_v33 }
 0x94a   : > { %v3062_v44 = vpack.c.bf16 %v3058_v38, %v3054_v36 }
 0x94b   : > { %v3064_v6 = vpack.c.bf16 %v3060_v42, %v3056_v40 }
 0x94c   : > { %3360 = vmatprep.mubr.bf16.mxu1 %v3062_v44 }
 0x94d   : > { %3401 = vmatprep.mubr.bf16.mxu0 %v3064_v6  ;;  %3361 = vmatmul.mubr.bf16.vlgmr.msra.gmra.mrb[32].mxu1 %v3061_v39 }
 0x94e   : > { %3402 = vmatmul.mubr.bf16.vlgmr.msra.gmra.mrb[20].mxu0 %v3063_v43 }
 0xa20   : > { %v3770_v7 = vpop.f32.mrb[32].mxu1 }
 0xa21   : > { %v3792_v61 = vpop.f32.mrb[20].mxu0  ;;  %v3771_v17 = vpop.f32.mrb[33].mxu1 }
 0xa22   : > { %v3772_v60 = vadd.f32 %v3771_v17, %v3770_v7  ;;  %v3793_v22 = vpop.f32.mrb[21].mxu0  ;;  %v3773_v46 = vpop.f32.mrb[34].mxu1 }
 0xa23   : > { %v3794_v8 = vadd.f32 %v3793_v22, %v3792_v61  ;;  %v3795_v57 = vpop.f32.mrb[22].mxu0  ;;  %v3774_v47 = vpop.f32.mrb[35].mxu1 }
 0xa24   : > { %v3363_v53 = vadd.f32 %v3772_v60, %v3680_v20  ;;  %v3775_v54 = vadd.f32 %v3774_v47, %v3773_v46  ;;  %v3796_v23 = vpop.f32.mrb[23].mxu0 }
 0xa25   : > { %v3797_v56 = vadd.f32 %v3796_v23, %v3795_v57 }
 0xa26   : > { %v3404_v29 = vadd.f32 %v3794_v8, %v3363_v53  ;;  %v3366_v11 = vadd.f32 %v3775_v54, %v3680_v20 }
 0xa28   : > { %v3410_v5 = vadd.f32 %v3404_v29, %v5257_v28  ;;  %v3407_v21 = vadd.f32 %v3797_v56, %v3366_v11 }
 0xa2a   : > { %3412 = vst [vmem:[%s541_s23] sm:$0xff] %v3410_v5  ;;  %v3411_v9 = vadd.f32 %v3407_v21, %v5260_v2 }
 0xa2c   : > { %3413 = vst [vmem:[%s541_s23 + $0x8] sm:$0xff] %v3411_v9 }
 0xa2d   : > { %4415 = shalt.err (!%p4412_p8)
}
 0xa2e   : > { %s4416_s21 = scalar_lea.hbm %s5354_s30, 256  ;;  %s4420_s23 = scalar_lea.hbm %s5446_s13, 512 }
 0xa2f   : > { %p4417_p10 = scmp.ne.s32.totalorder %s5354_s30, %s4416_s21  ;;  %p4421_p0 = scmp.lt.u32.totalorder %s5354_s30, %s5446_s13 }
 0xa30   : > { %p4422_p5 = scmp.lt.u32.totalorder %s4420_s23, %s4416_s21  ;;  %p4424_p6 = scmp.lt.u32.totalorder %s4416_s21, %s5354_s30 }
 0xa31   : > { %p4418_p11 = pnand %p4417_p10, %p5447_p9 }
 0xa32   : > { %p4423_p7 = por %p4422_p5, %p4421_p0 }
 0xa33   : > { %p4419_p12 = pneg %p4418_p11 }
 0xa34   : > { %p4425_p4 = por %p4424_p6, %p4423_p7 }
 0xa36   : > { %p4426_p13 = pnand %p4425_p4, %p4419_p12 }
 0xa38   : > { %4429 = shalt.err (!%p4426_p13)
}
 0xa39   : > { %s4506_s8 = smov 128   ;;  %s4507_s15 = smov 8  }
 0xa3a   : > { %3912 = dma.vmem_to_hbm [thread:$0]  (%p5447_p9), %s5349_s19, 256, %s5354_s30, %s3415_s12, %s4506_s8, %s4506_s8, %s4507_s15  }
 0xa3b PF: > { %s3443_s14 = sand.u32 1, %s4468_s25   ;;  %p5448_p1 = scmp.ne.s32.totalorder %s5433_s7, 0 }
 0xa3c   : > { %p5449_p3 = scmp.ge.s32.totalorder %s4480_s28, 2  ;;  %s3444_s24 = scalar_lea.sflag [#allocation4], %s3443_s14 }
 0xa3e   : > { %p3938_p2 = pnand %p5449_p3, %p5448_p1 }
 0xa40   : > { %4463 = dma.done.wait (!%p3938_p2), %s3444_s24, 256  }
 0xa41   : > { %4465 = vsyncadd (!%p3938_p2), %s3444_s24, 4294967040  ;;  %p29_p8 = scmp.ge.s32.totalorder %s4755_s18, 4   ;;  %s5450_s25 = smov %s4472_s26 }
 0xa42   : > { %s5451_s26 = smov %s4476_s27  ;;  %s5452_s27 = smov %s4766_s10 }
 0xa43   : > { %s5453_s28 = smov %s4755_s18  ;;  %31 = sbr.rel (!%p29_p8) target bundleno = 16 (0x10), region = 141 }
 0xa4a   :  { %3449 = vsyncpa [#allocation3], 1 }
 0xa4b   :  { %3451 = vsyncpa [#allocation3 + $0x1], 1 }
 0xa4c   :  { %3452 = vsyncpa [#allocation6], 1 }
 0xa4d   :  { %3453 = vsyncpa [#allocation9], 1 }
 0xa4e   :  { %3454 = vsyncpa [#allocation12], 1 }
 0xa4f   :  { %3455 = vsyncpa [#allocation4], 1 }
 0xa50   :  { %3457 = vsyncpa [#allocation4 + $0x1], 1 }

</bundles_post_ra>
